<compile_context>
chip_gen: v7x
topology: tpu7x:2x2x1
jax: 0.10.0
libtpu: 0.0.40
codegen_flags: <defaults>
</compile_context>

<pallas_src>
import jax
import jax.numpy as jnp
from jax.experimental import pallas as pl
from jax.experimental.pallas import tpu as pltpu


# ---------------------------------------------------------------------------
# Kernel: one bidirectional GRU layer (both directions), optional mean+FC tail.
# ---------------------------------------------------------------------------
def _make_bigru_layer_kernel(T, B, H, is_last):
    G = 3 * H

    def gru_cell(xg, h_prev, w_hh_bf16, b_hn_bcast):
        # xg:        (B, 3H) f32  precomputed input projection (+ folded biases)
        # h_prev:    (B, H)  f32
        # w_hh_bf16: (H, 3H) bf16 fused recurrent weights (gate order r, z, n)
        # b_hn_bcast:(B, 3H) f32  only the n-slice is nonzero (= b_hn)
        gh = jnp.dot(h_prev.astype(jnp.bfloat16), w_hh_bf16,
                     preferred_element_type=jnp.float32) + b_hn_bcast
        r = jax.nn.sigmoid(xg[:, :H] + gh[:, :H])
        z = jax.nn.sigmoid(xg[:, H:2 * H] + gh[:, H:2 * H])
        n = jnp.tanh(xg[:, 2 * H:] + r * gh[:, 2 * H:])
        return (1.0 - z) * n + z * h_prev

    def kernel(*refs):
        if is_last:
            (x_ref, wih_ref, whh_ref, bi_ref, bhn_ref, wfc_ref, bfc_ref,
             out_ref, ipf_ref, ipb_ref) = refs
        else:
            (x_ref, wih_ref, whh_ref, bi_ref, bhn_ref,
             out_ref, ipf_ref, ipb_ref) = refs

        # ---- Phase 1: time-independent input projections, one big MXU matmul
        #      per direction (hoisted off the recurrent critical path).
        x_bf = x_ref[...].astype(jnp.bfloat16)                       # (T*B, D)
        ipf_ref[...] = jnp.dot(x_bf, wih_ref[0],
                               preferred_element_type=jnp.float32) + bi_ref[0]
        ipb_ref[...] = jnp.dot(x_bf, wih_ref[1],
                               preferred_element_type=jnp.float32) + bi_ref[1]

        # ---- Hoist loop-invariant loads / broadcasts out of the recurrence.
        whh_f = whh_ref[0]                                           # (H, 3H) bf16
        whh_b = whh_ref[1]
        bhn_f = jnp.broadcast_to(bhn_ref[0], (B, G))                 # (B, 3H) f32
        bhn_b = jnp.broadcast_to(bhn_ref[1], (B, G))

        zeros = jnp.zeros((B, H), jnp.float32)

        # ---- Phase 2: recurrence. fwd consumes time t, bwd consumes time T-1-t.
        def step(t, carry):
            tb = T - 1 - t
            xg_f = ipf_ref[pl.ds(t * B, B), :]                       # (B, 3H)
            xg_b = ipb_ref[pl.ds(tb * B, B), :]
            if is_last:
                h_f, h_b, acc_f, acc_b = carry
            else:
                h_f, h_b = carry
            h_f = gru_cell(xg_f, h_f, whh_f, bhn_f)
            h_b = gru_cell(xg_b, h_b, whh_b, bhn_b)
            if is_last:
                # mean-over-time accumulators stay in vregs (no HBM writeback).
                return (h_f, h_b, acc_f + h_f, acc_b + h_b)
            out_ref[pl.ds(t * B, B), :H] = h_f
            out_ref[pl.ds(tb * B, B), H:] = h_b
            return (h_f, h_b)

        init = (zeros, zeros, zeros, zeros) if is_last else (zeros, zeros)
        final = jax.lax.fori_loop(0, T, step, init, unroll=(T <= 32))

        if is_last:
            # ---- Epilogue: mean over time + final Linear fused into this kernel.
            _, _, acc_f, acc_b = final
            mean = jnp.concatenate([acc_f, acc_b], axis=-1) * (1.0 / T)   # (B, 2H)
            out_ref[...] = (jnp.dot(mean.astype(jnp.bfloat16), wfc_ref[...],
                                    preferred_element_type=jnp.float32)
                            + bfc_ref[...])

    return kernel


def bigru_layer(x_flat, layer_params, *, T, B, fc_w=None, fc_b=None):
    """One bidirectional GRU layer.  x_flat: (T*B, D_in) time-major flattened.
    Returns (T*B, 2H) for hidden layers, or (B, C) logits if fc_w/fc_b given."""
    wih, whh, bi, bhn = layer_params
    H = whh.shape[1]
    is_last = fc_w is not None
    kernel = _make_bigru_layer_kernel(T, B, H, is_last)

    scratch = [pltpu.VMEM((T * B, 3 * H), jnp.float32),   # fwd input projections
               pltpu.VMEM((T * B, 3 * H), jnp.float32)]   # bwd input projections

    if is_last:
        C = fc_w.shape[-1]
        out_shape = jax.ShapeDtypeStruct((B, C), jnp.float32)
        inputs = (x_flat, wih, whh, bi, bhn, fc_w, fc_b)
    else:
        out_shape = jax.ShapeDtypeStruct((T * B, 2 * H), jnp.float32)
        inputs = (x_flat, wih, whh, bi, bhn)

    return pl.pallas_call(
        kernel,
        out_shape=out_shape,
        in_specs=[pl.BlockSpec(memory_space=pltpu.MemorySpace.VMEM)] * len(inputs),
        out_specs=pl.BlockSpec(memory_space=pltpu.MemorySpace.VMEM),
        scratch_shapes=scratch,
        compiler_params=pltpu.CompilerParams(vmem_limit_bytes=32 * 1024 * 1024),
    )(*inputs)


# ---------------------------------------------------------------------------
# Parameter construction (deterministic xavier-uniform weights, zero biases —
# matching the module's init_weights). Weights stored pre-fused / pre-transposed.
# ---------------------------------------------------------------------------
def xavier_uniform(key, shape_torch):
    fan_out, fan_in = shape_torch
    bound = jnp.sqrt(6.0 / (fan_in + fan_out))
    return jax.random.uniform(key, shape_torch, jnp.float32, -bound, bound)


def init_bigru_params(key, input_dim, hidden_dim, num_layers, num_classes):
    H = hidden_dim
    params = {"layers": []}
    for layer in range(num_layers):
        d_in = input_dim if layer == 0 else 2 * H
        wih_dirs, whh_dirs, bi_dirs, bhn_dirs = [], [], [], []
        for _ in range(2):  # forward, backward
            key, k1, k2 = jax.random.split(key, 3)
            # PyTorch storage: weight_ih (3H, d_in), weight_hh (3H, H), gate order r,z,n.
            w_ih = xavier_uniform(k1, (3 * H, d_in))
            w_hh = xavier_uniform(k2, (3 * H, H))
            b_ih = jnp.zeros((3 * H,), jnp.float32)   # init_weights zeros all biases
            b_hh = jnp.zeros((3 * H,), jnp.float32)
            # Fused, transposed, bf16 layouts for the kernel.
            wih_dirs.append(jnp.transpose(w_ih).astype(jnp.bfloat16))   # (d_in, 3H)
            whh_dirs.append(jnp.transpose(w_hh).astype(jnp.bfloat16))   # (H, 3H)
            # Fold b_ih+b_hh for r,z into the input projection; keep input-side b_in;
            # b_hn stays on the hidden projection (inside the r*(.) term).
            bi = jnp.concatenate([b_ih[:2 * H] + b_hh[:2 * H], b_ih[2 * H:]])
            bhn = jnp.concatenate([jnp.zeros((2 * H,), jnp.float32), b_hh[2 * H:]])
            bi_dirs.append(bi[None, :])
            bhn_dirs.append(bhn[None, :])
        params["layers"].append((
            jnp.stack(wih_dirs),    # (2, d_in, 3H) bf16
            jnp.stack(whh_dirs),    # (2, H,   3H) bf16
            jnp.stack(bi_dirs),     # (2, 1,   3H) f32
            jnp.stack(bhn_dirs),    # (2, 1,   3H) f32
        ))
    key, kfc = jax.random.split(key)
    w_fc = xavier_uniform(kfc, (num_classes, 2 * H))                     # (C, 2H)
    params["fc_w"] = jnp.transpose(w_fc).astype(jnp.bfloat16)            # (2H, C)
    params["fc_b"] = jnp.zeros((1, num_classes), jnp.float32)
    return params


# ---------------------------------------------------------------------------
# Full forward pass (eval mode): stacked BiGRU -> mean over time -> Linear.
# ---------------------------------------------------------------------------
def bigru_model_forward(x_btd, params):
    B, T, D = x_btd.shape
    # Batch-first (B,T,D) -> time-major flattened (T*B, D); all in-kernel ops are 2-D.
    h = jnp.transpose(x_btd, (1, 0, 2)).astype(jnp.float32).reshape(T * B, D)
    n_layers = len(params["layers"])
    out = None
    for li, layer_p in enumerate(params["layers"]):
        if li == n_layers - 1:
            # Last layer fuses mean-over-time + FC (dropout is identity in eval mode).
            out = bigru_layer(h, layer_p, T=T, B=B,
                              fc_w=params["fc_w"], fc_b=params["fc_b"])
        else:
            h = bigru_layer(h, layer_p, T=T, B=B)
    return out                                                          # (B, C)


if __name__ == "__main__":
    # Small shapes consistent with the module's forward (real model: D=100, H=128).
    B, T = 2, 8
    INPUT_DIM, HIDDEN_DIM, NUM_LAYERS, NUM_CLASSES = 16, 32, 2, 3

    key = jax.random.PRNGKey(0)
    key, kx, kp = jax.random.split(key, 3)
    x = jax.random.normal(kx, (B, T, INPUT_DIM), jnp.float32)
    params = init_bigru_params(kp, INPUT_DIM, HIDDEN_DIM, NUM_LAYERS, NUM_CLASSES)

    out = bigru_model_forward(x, params)
    out = jax.block_until_ready(out)
    assert out.shape == (B, NUM_CLASSES)
    print("KERNEL_OK")
</pallas_src>

<mosaic_0001>
module attributes {stable_mosaic.version = 11 : i64} {
  func.func @kernel(%arg0: memref<16x16xf32, #tpu.memory_space<vmem>>, %arg1: memref<2x16x96xbf16, #tpu.memory_space<vmem>>, %arg2: memref<2x32x96xbf16, #tpu.memory_space<vmem>>, %arg3: memref<2x1x96xf32, #tpu.memory_space<vmem>>, %arg4: memref<2x1x96xf32, #tpu.memory_space<vmem>>, %arg5: memref<16x64xf32, #tpu.memory_space<vmem>>, %arg6: memref<16x96xf32, #tpu.memory_space<vmem>>, %arg7: memref<16x96xf32, #tpu.memory_space<vmem>>) attributes {dimension_semantics = [], scalar_prefetch = 0 : i64, scratch_operands = 2 : i64, tpu.core_type = #tpu.core_type<tc>} {
    %c0 = arith.constant 0 : index
    %c0_0 = arith.constant 0 : index
    %0 = vector.load %arg0[%c0, %c0_0] : memref<16x16xf32, #tpu.memory_space<vmem>>, vector<16x16xf32>
    %1 = arith.truncf %0 : vector<16x16xf32> to vector<16x16xbf16>
    %c0_1 = arith.constant 0 : index
    %c0_2 = arith.constant 0 : index
    %c0_3 = arith.constant 0 : index
    %2 = vector.load %arg1[%c0_1, %c0_2, %c0_3] : memref<2x16x96xbf16, #tpu.memory_space<vmem>>, vector<1x16x96xbf16>
    %3 = vector.shape_cast %2 : vector<1x16x96xbf16> to vector<16x96xbf16>
    %cst = arith.constant dense<0.000000e+00> : vector<16x96xf32>
    %4 = tpu.matmul %1, %3, %cst {dimension_numbers = #tpu.dot_dimension_numbers<[1], [0], [0], [1], [0, 0, 1, 1], [], []>} : vector<16x16xbf16>, vector<16x96xbf16>, vector<16x96xf32> -> vector<16x96xf32>
    %c0_4 = arith.constant 0 : index
    %c0_5 = arith.constant 0 : index
    %c0_6 = arith.constant 0 : index
    %5 = vector.load %arg3[%c0_4, %c0_5, %c0_6] : memref<2x1x96xf32, #tpu.memory_space<vmem>>, vector<1x1x96xf32>
    %6 = vector.shape_cast %5 : vector<1x1x96xf32> to vector<1x96xf32>
    %7 = vector.broadcast %6 : vector<1x96xf32> to vector<16x96xf32>
    %8 = arith.addf %4, %7 : vector<16x96xf32>
    %c0_7 = arith.constant 0 : index
    %c0_8 = arith.constant 0 : index
    %9 = vector.load %arg6[%c0_7, %c0_8] : memref<16x96xf32, #tpu.memory_space<vmem>>, vector<16x96xf32>
    tpu.vector_store %arg6[%c0_7, %c0_8], %8 {strides = array<i32>} : memref<16x96xf32, #tpu.memory_space<vmem>>, vector<16x96xf32>,
    %c1 = arith.constant 1 : index
    %c0_9 = arith.constant 0 : index
    %c0_10 = arith.constant 0 : index
    %10 = vector.load %arg1[%c1, %c0_9, %c0_10] : memref<2x16x96xbf16, #tpu.memory_space<vmem>>, vector<1x16x96xbf16>
    %11 = vector.shape_cast %10 : vector<1x16x96xbf16> to vector<16x96xbf16>
    %cst_11 = arith.constant dense<0.000000e+00> : vector<16x96xf32>
    %12 = tpu.matmul %1, %11, %cst_11 {dimension_numbers = #tpu.dot_dimension_numbers<[1], [0], [0], [1], [0, 0, 1, 1], [], []>} : vector<16x16xbf16>, vector<16x96xbf16>, vector<16x96xf32> -> vector<16x96xf32>
    %c1_12 = arith.constant 1 : index
    %c0_13 = arith.constant 0 : index
    %c0_14 = arith.constant 0 : index
    %13 = vector.load %arg3[%c1_12, %c0_13, %c0_14] : memref<2x1x96xf32, #tpu.memory_space<vmem>>, vector<1x1x96xf32>
    %14 = vector.shape_cast %13 : vector<1x1x96xf32> to vector<1x96xf32>
    %15 = vector.broadcast %14 : vector<1x96xf32> to vector<16x96xf32>
    %16 = arith.addf %12, %15 : vector<16x96xf32>
    %c0_15 = arith.constant 0 : index
    %c0_16 = arith.constant 0 : index
    %17 = vector.load %arg7[%c0_15, %c0_16] : memref<16x96xf32, #tpu.memory_space<vmem>>, vector<16x96xf32>
    tpu.vector_store %arg7[%c0_15, %c0_16], %16 {strides = array<i32>} : memref<16x96xf32, #tpu.memory_space<vmem>>, vector<16x96xf32>,
    %c0_17 = arith.constant 0 : index
    %c0_18 = arith.constant 0 : index
    %c0_19 = arith.constant 0 : index
    %18 = vector.load %arg2[%c0_17, %c0_18, %c0_19] : memref<2x32x96xbf16, #tpu.memory_space<vmem>>, vector<1x32x96xbf16>
    %19 = vector.shape_cast %18 : vector<1x32x96xbf16> to vector<32x96xbf16>
    %c1_20 = arith.constant 1 : index
    %c0_21 = arith.constant 0 : index
    %c0_22 = arith.constant 0 : index
    %20 = vector.load %arg2[%c1_20, %c0_21, %c0_22] : memref<2x32x96xbf16, #tpu.memory_space<vmem>>, vector<1x32x96xbf16>
    %21 = vector.shape_cast %20 : vector<1x32x96xbf16> to vector<32x96xbf16>
    %c0_23 = arith.constant 0 : index
    %c0_24 = arith.constant 0 : index
    %c0_25 = arith.constant 0 : index
    %22 = vector.load %arg4[%c0_23, %c0_24, %c0_25] : memref<2x1x96xf32, #tpu.memory_space<vmem>>, vector<1x1x96xf32>
    %23 = vector.shape_cast %22 : vector<1x1x96xf32> to vector<1x96xf32>
    %24 = vector.shape_cast %23 : vector<1x96xf32> to vector<1x96xf32>
    %25 = vector.broadcast %24 : vector<1x96xf32> to vector<2x96xf32>
    %c1_26 = arith.constant 1 : index
    %c0_27 = arith.constant 0 : index
    %c0_28 = arith.constant 0 : index
    %26 = vector.load %arg4[%c1_26, %c0_27, %c0_28] : memref<2x1x96xf32, #tpu.memory_space<vmem>>, vector<1x1x96xf32>
    %27 = vector.shape_cast %26 : vector<1x1x96xf32> to vector<1x96xf32>
    %28 = vector.shape_cast %27 : vector<1x96xf32> to vector<1x96xf32>
    %29 = vector.broadcast %28 : vector<1x96xf32> to vector<2x96xf32>
    %cst_29 = arith.constant 0.000000e+00 : f32
    %30 = vector.broadcast %cst_29 : f32 to vector<2x32xf32>
    %c0_i32 = arith.constant 0 : i32
    %c7_i32 = arith.constant 7 : i32
    %31 = arith.subi %c7_i32, %c0_i32 : i32
    %c2_i32 = arith.constant 2 : i32
    %32 = arith.muli %c0_i32, %c2_i32 : i32
    %33 = arith.index_cast %32 : i32 to index
    %c0_30 = arith.constant 0 : index
    %34 = vector.load %arg6[%33, %c0_30] : memref<16x96xf32, #tpu.memory_space<vmem>>, vector<2x96xf32>
    %c2_i32_31 = arith.constant 2 : i32
    %35 = arith.muli %31, %c2_i32_31 : i32
    %36 = arith.index_cast %35 : i32 to index
    %c0_32 = arith.constant 0 : index
    %37 = vector.load %arg7[%36, %c0_32] : memref<16x96xf32, #tpu.memory_space<vmem>>, vector<2x96xf32>
    %38 = arith.truncf %30 : vector<2x32xf32> to vector<2x32xbf16>
    %cst_33 = arith.constant dense<0.000000e+00> : vector<2x96xf32>
    %39 = tpu.matmul %38, %19, %cst_33 {dimension_numbers = #tpu.dot_dimension_numbers<[1], [0], [0], [1], [0, 0, 1, 1], [], []>} : vector<2x32xbf16>, vector<32x96xbf16>, vector<2x96xf32> -> vector<2x96xf32>
    %40 = arith.addf %39, %25 : vector<2x96xf32>
    %41 = vector.extract_strided_slice %34 {offsets = [0, 0], sizes = [2, 32], strides = [1, 1]} : vector<2x96xf32> to vector<2x32xf32>
    %42 = vector.extract_strided_slice %40 {offsets = [0, 0], sizes = [2, 32], strides = [1, 1]} : vector<2x96xf32> to vector<2x32xf32>
    %43 = arith.addf %41, %42 : vector<2x32xf32>
    %44 = arith.negf %43 : vector<2x32xf32>
    %45 = math.exp %44 : vector<2x32xf32>
    %cst_34 = arith.constant 1.000000e+00 : f32
    %46 = vector.broadcast %cst_34 : f32 to vector<2x32xf32>
    %47 = arith.addf %46, %45 : vector<2x32xf32>
    %48 = arith.divf %46, %47 : vector<2x32xf32>
    %49 = vector.extract_strided_slice %34 {offsets = [0, 32], sizes = [2, 32], strides = [1, 1]} : vector<2x96xf32> to vector<2x32xf32>
    %50 = vector.extract_strided_slice %40 {offsets = [0, 32], sizes = [2, 32], strides = [1, 1]} : vector<2x96xf32> to vector<2x32xf32>
    %51 = arith.addf %49, %50 : vector<2x32xf32>
    %52 = arith.negf %51 : vector<2x32xf32>
    %53 = math.exp %52 : vector<2x32xf32>
    %cst_35 = arith.constant 1.000000e+00 : f32
    %54 = vector.broadcast %cst_35 : f32 to vector<2x32xf32>
    %55 = arith.addf %54, %53 : vector<2x32xf32>
    %56 = arith.divf %54, %55 : vector<2x32xf32>
    %57 = vector.extract_strided_slice %34 {offsets = [0, 64], sizes = [2, 32], strides = [1, 1]} : vector<2x96xf32> to vector<2x32xf32>
    %58 = vector.extract_strided_slice %40 {offsets = [0, 64], sizes = [2, 32], strides = [1, 1]} : vector<2x96xf32> to vector<2x32xf32>
    %59 = arith.mulf %48, %58 : vector<2x32xf32>
    %60 = arith.addf %57, %59 : vector<2x32xf32>
    %61 = math.tanh %60 : vector<2x32xf32>
    %cst_36 = arith.constant 1.000000e+00 : f32
    %62 = vector.broadcast %cst_36 : f32 to vector<2x32xf32>
    %63 = arith.subf %62, %56 : vector<2x32xf32>
    %64 = arith.mulf %63, %61 : vector<2x32xf32>
    %65 = arith.mulf %56, %30 : vector<2x32xf32>
    %66 = arith.addf %64, %65 : vector<2x32xf32>
    %67 = arith.truncf %30 : vector<2x32xf32> to vector<2x32xbf16>
    %cst_37 = arith.constant dense<0.000000e+00> : vector<2x96xf32>
    %68 = tpu.matmul %67, %21, %cst_37 {dimension_numbers = #tpu.dot_dimension_numbers<[1], [0], [0], [1], [0, 0, 1, 1], [], []>} : vector<2x32xbf16>, vector<32x96xbf16>, vector<2x96xf32> -> vector<2x96xf32>
    %69 = arith.addf %68, %29 : vector<2x96xf32>
    %70 = vector.extract_strided_slice %37 {offsets = [0, 0], sizes = [2, 32], strides = [1, 1]} : vector<2x96xf32> to vector<2x32xf32>
    %71 = vector.extract_strided_slice %69 {offsets = [0, 0], sizes = [2, 32], strides = [1, 1]} : vector<2x96xf32> to vector<2x32xf32>
    %72 = arith.addf %70, %71 : vector<2x32xf32>
    %73 = arith.negf %72 : vector<2x32xf32>
    %74 = math.exp %73 : vector<2x32xf32>
    %cst_38 = arith.constant 1.000000e+00 : f32
    %75 = vector.broadcast %cst_38 : f32 to vector<2x32xf32>
    %76 = arith.addf %75, %74 : vector<2x32xf32>
    %77 = arith.divf %75, %76 : vector<2x32xf32>
    %78 = vector.extract_strided_slice %37 {offsets = [0, 32], sizes = [2, 32], strides = [1, 1]} : vector<2x96xf32> to vector<2x32xf32>
    %79 = vector.extract_strided_slice %69 {offsets = [0, 32], sizes = [2, 32], strides = [1, 1]} : vector<2x96xf32> to vector<2x32xf32>
    %80 = arith.addf %78, %79 : vector<2x32xf32>
    %81 = arith.negf %80 : vector<2x32xf32>
    %82 = math.exp %81 : vector<2x32xf32>
    %cst_39 = arith.constant 1.000000e+00 : f32
    %83 = vector.broadcast %cst_39 : f32 to vector<2x32xf32>
    %84 = arith.addf %83, %82 : vector<2x32xf32>
    %85 = arith.divf %83, %84 : vector<2x32xf32>
    %86 = vector.extract_strided_slice %37 {offsets = [0, 64], sizes = [2, 32], strides = [1, 1]} : vector<2x96xf32> to vector<2x32xf32>
    %87 = vector.extract_strided_slice %69 {offsets = [0, 64], sizes = [2, 32], strides = [1, 1]} : vector<2x96xf32> to vector<2x32xf32>
    %88 = arith.mulf %77, %87 : vector<2x32xf32>
    %89 = arith.addf %86, %88 : vector<2x32xf32>
    %90 = math.tanh %89 : vector<2x32xf32>
    %cst_40 = arith.constant 1.000000e+00 : f32
    %91 = vector.broadcast %cst_40 : f32 to vector<2x32xf32>
    %92 = arith.subf %91, %85 : vector<2x32xf32>
    %93 = arith.mulf %92, %90 : vector<2x32xf32>
    %94 = arith.mulf %85, %30 : vector<2x32xf32>
    %95 = arith.addf %93, %94 : vector<2x32xf32>
    %c2_i32_41 = arith.constant 2 : i32
    %96 = arith.muli %c0_i32, %c2_i32_41 : i32
    %97 = arith.index_cast %96 : i32 to index
    %c0_42 = arith.constant 0 : index
    %98 = vector.load %arg5[%97, %c0_42] : memref<16x64xf32, #tpu.memory_space<vmem>>, vector<2x32xf32>
    tpu.vector_store %arg5[%97, %c0_42], %66 {strides = array<i32>} : memref<16x64xf32, #tpu.memory_space<vmem>>, vector<2x32xf32>,
    %c2_i32_43 = arith.constant 2 : i32
    %99 = arith.muli %31, %c2_i32_43 : i32
    %100 = arith.index_cast %99 : i32 to index
    %c32 = arith.constant 32 : index
    %101 = vector.load %arg5[%100, %c32] : memref<16x64xf32, #tpu.memory_space<vmem>>, vector<2x32xf32>
    tpu.vector_store %arg5[%100, %c32], %95 {strides = array<i32>} : memref<16x64xf32, #tpu.memory_space<vmem>>, vector<2x32xf32>,
    %c1_i32 = arith.constant 1 : i32
    %c7_i32_44 = arith.constant 7 : i32
    %102 = arith.subi %c7_i32_44, %c1_i32 : i32
    %c2_i32_45 = arith.constant 2 : i32
    %103 = arith.muli %c1_i32, %c2_i32_45 : i32
    %104 = arith.index_cast %103 : i32 to index
    %c0_46 = arith.constant 0 : index
    %105 = vector.load %arg6[%104, %c0_46] : memref<16x96xf32, #tpu.memory_space<vmem>>, vector<2x96xf32>
    %c2_i32_47 = arith.constant 2 : i32
    %106 = arith.muli %102, %c2_i32_47 : i32
    %107 = arith.index_cast %106 : i32 to index
    %c0_48 = arith.constant 0 : index
    %108 = vector.load %arg7[%107, %c0_48] : memref<16x96xf32, #tpu.memory_space<vmem>>, vector<2x96xf32>
    %109 = arith.truncf %66 : vector<2x32xf32> to vector<2x32xbf16>
    %cst_49 = arith.constant dense<0.000000e+00> : vector<2x96xf32>
    %110 = tpu.matmul %109, %19, %cst_49 {dimension_numbers = #tpu.dot_dimension_numbers<[1], [0], [0], [1], [0, 0, 1, 1], [], []>} : vector<2x32xbf16>, vector<32x96xbf16>, vector<2x96xf32> -> vector<2x96xf32>
    %111 = arith.addf %110, %25 : vector<2x96xf32>
    %112 = vector.extract_strided_slice %105 {offsets = [0, 0], sizes = [2, 32], strides = [1, 1]} : vector<2x96xf32> to vector<2x32xf32>
    %113 = vector.extract_strided_slice %111 {offsets = [0, 0], sizes = [2, 32], strides = [1, 1]} : vector<2x96xf32> to vector<2x32xf32>
    %114 = arith.addf %112, %113 : vector<2x32xf32>
    %115 = arith.negf %114 : vector<2x32xf32>
    %116 = math.exp %115 : vector<2x32xf32>
    %cst_50 = arith.constant 1.000000e+00 : f32
    %117 = vector.broadcast %cst_50 : f32 to vector<2x32xf32>
    %118 = arith.addf %117, %116 : vector<2x32xf32>
    %119 = arith.divf %117, %118 : vector<2x32xf32>
    %120 = vector.extract_strided_slice %105 {offsets = [0, 32], sizes = [2, 32], strides = [1, 1]} : vector<2x96xf32> to vector<2x32xf32>
    %121 = vector.extract_strided_slice %111 {offsets = [0, 32], sizes = [2, 32], strides = [1, 1]} : vector<2x96xf32> to vector<2x32xf32>
    %122 = arith.addf %120, %121 : vector<2x32xf32>
    %123 = arith.negf %122 : vector<2x32xf32>
    %124 = math.exp %123 : vector<2x32xf32>
    %cst_51 = arith.constant 1.000000e+00 : f32
    %125 = vector.broadcast %cst_51 : f32 to vector<2x32xf32>
    %126 = arith.addf %125, %124 : vector<2x32xf32>
    %127 = arith.divf %125, %126 : vector<2x32xf32>
    %128 = vector.extract_strided_slice %105 {offsets = [0, 64], sizes = [2, 32], strides = [1, 1]} : vector<2x96xf32> to vector<2x32xf32>
    %129 = vector.extract_strided_slice %111 {offsets = [0, 64], sizes = [2, 32], strides = [1, 1]} : vector<2x96xf32> to vector<2x32xf32>
    %130 = arith.mulf %119, %129 : vector<2x32xf32>
    %131 = arith.addf %128, %130 : vector<2x32xf32>
    %132 = math.tanh %131 : vector<2x32xf32>
    %cst_52 = arith.constant 1.000000e+00 : f32
    %133 = vector.broadcast %cst_52 : f32 to vector<2x32xf32>
    %134 = arith.subf %133, %127 : vector<2x32xf32>
    %135 = arith.mulf %134, %132 : vector<2x32xf32>
    %136 = arith.mulf %127, %66 : vector<2x32xf32>
    %137 = arith.addf %135, %136 : vector<2x32xf32>
    %138 = arith.truncf %95 : vector<2x32xf32> to vector<2x32xbf16>
    %cst_53 = arith.constant dense<0.000000e+00> : vector<2x96xf32>
    %139 = tpu.matmul %138, %21, %cst_53 {dimension_numbers = #tpu.dot_dimension_numbers<[1], [0], [0], [1], [0, 0, 1, 1], [], []>} : vector<2x32xbf16>, vector<32x96xbf16>, vector<2x96xf32> -> vector<2x96xf32>
    %140 = arith.addf %139, %29 : vector<2x96xf32>
    %141 = vector.extract_strided_slice %108 {offsets = [0, 0], sizes = [2, 32], strides = [1, 1]} : vector<2x96xf32> to vector<2x32xf32>
    %142 = vector.extract_strided_slice %140 {offsets = [0, 0], sizes = [2, 32], strides = [1, 1]} : vector<2x96xf32> to vector<2x32xf32>
    %143 = arith.addf %141, %142 : vector<2x32xf32>
    %144 = arith.negf %143 : vector<2x32xf32>
    %145 = math.exp %144 : vector<2x32xf32>
    %cst_54 = arith.constant 1.000000e+00 : f32
    %146 = vector.broadcast %cst_54 : f32 to vector<2x32xf32>
    %147 = arith.addf %146, %145 : vector<2x32xf32>
    %148 = arith.divf %146, %147 : vector<2x32xf32>
    %149 = vector.extract_strided_slice %108 {offsets = [0, 32], sizes = [2, 32], strides = [1, 1]} : vector<2x96xf32> to vector<2x32xf32>
    %150 = vector.extract_strided_slice %140 {offsets = [0, 32], sizes = [2, 32], strides = [1, 1]} : vector<2x96xf32> to vector<2x32xf32>
    %151 = arith.addf %149, %150 : vector<2x32xf32>
    %152 = arith.negf %151 : vector<2x32xf32>
    %153 = math.exp %152 : vector<2x32xf32>
    %cst_55 = arith.constant 1.000000e+00 : f32
    %154 = vector.broadcast %cst_55 : f32 to vector<2x32xf32>
    %155 = arith.addf %154, %153 : vector<2x32xf32>
    %156 = arith.divf %154, %155 : vector<2x32xf32>
    %157 = vector.extract_strided_slice %108 {offsets = [0, 64], sizes = [2, 32], strides = [1, 1]} : vector<2x96xf32> to vector<2x32xf32>
    %158 = vector.extract_strided_slice %140 {offsets = [0, 64], sizes = [2, 32], strides = [1, 1]} : vector<2x96xf32> to vector<2x32xf32>
    %159 = arith.mulf %148, %158 : vector<2x32xf32>
    %160 = arith.addf %157, %159 : vector<2x32xf32>
    %161 = math.tanh %160 : vector<2x32xf32>
    %cst_56 = arith.constant 1.000000e+00 : f32
    %162 = vector.broadcast %cst_56 : f32 to vector<2x32xf32>
    %163 = arith.subf %162, %156 : vector<2x32xf32>
    %164 = arith.mulf %163, %161 : vector<2x32xf32>
    %165 = arith.mulf %156, %95 : vector<2x32xf32>
    %166 = arith.addf %164, %165 : vector<2x32xf32>
    %c2_i32_57 = arith.constant 2 : i32
    %167 = arith.muli %c1_i32, %c2_i32_57 : i32
    %168 = arith.index_cast %167 : i32 to index
    %c0_58 = arith.constant 0 : index
    %169 = vector.load %arg5[%168, %c0_58] : memref<16x64xf32, #tpu.memory_space<vmem>>, vector<2x32xf32>
    tpu.vector_store %arg5[%168, %c0_58], %137 {strides = array<i32>} : memref<16x64xf32, #tpu.memory_space<vmem>>, vector<2x32xf32>,
    %c2_i32_59 = arith.constant 2 : i32
    %170 = arith.muli %102, %c2_i32_59 : i32
    %171 = arith.index_cast %170 : i32 to index
    %c32_60 = arith.constant 32 : index
    %172 = vector.load %arg5[%171, %c32_60] : memref<16x64xf32, #tpu.memory_space<vmem>>, vector<2x32xf32>
    tpu.vector_store %arg5[%171, %c32_60], %166 {strides = array<i32>} : memref<16x64xf32, #tpu.memory_space<vmem>>, vector<2x32xf32>,
    %c2_i32_61 = arith.constant 2 : i32
    %c7_i32_62 = arith.constant 7 : i32
    %173 = arith.subi %c7_i32_62, %c2_i32_61 : i32
    %c2_i32_63 = arith.constant 2 : i32
    %174 = arith.muli %c2_i32_61, %c2_i32_63 : i32
    %175 = arith.index_cast %174 : i32 to index
    %c0_64 = arith.constant 0 : index
    %176 = vector.load %arg6[%175, %c0_64] : memref<16x96xf32, #tpu.memory_space<vmem>>, vector<2x96xf32>
    %c2_i32_65 = arith.constant 2 : i32
    %177 = arith.muli %173, %c2_i32_65 : i32
    %178 = arith.index_cast %177 : i32 to index
    %c0_66 = arith.constant 0 : index
    %179 = vector.load %arg7[%178, %c0_66] : memref<16x96xf32, #tpu.memory_space<vmem>>, vector<2x96xf32>
    %180 = arith.truncf %137 : vector<2x32xf32> to vector<2x32xbf16>
    %cst_67 = arith.constant dense<0.000000e+00> : vector<2x96xf32>
    %181 = tpu.matmul %180, %19, %cst_67 {dimension_numbers = #tpu.dot_dimension_numbers<[1], [0], [0], [1], [0, 0, 1, 1], [], []>} : vector<2x32xbf16>, vector<32x96xbf16>, vector<2x96xf32> -> vector<2x96xf32>
    %182 = arith.addf %181, %25 : vector<2x96xf32>
    %183 = vector.extract_strided_slice %176 {offsets = [0, 0], sizes = [2, 32], strides = [1, 1]} : vector<2x96xf32> to vector<2x32xf32>
    %184 = vector.extract_strided_slice %182 {offsets = [0, 0], sizes = [2, 32], strides = [1, 1]} : vector<2x96xf32> to vector<2x32xf32>
    %185 = arith.addf %183, %184 : vector<2x32xf32>
    %186 = arith.negf %185 : vector<2x32xf32>
    %187 = math.exp %186 : vector<2x32xf32>
    %cst_68 = arith.constant 1.000000e+00 : f32
    %188 = vector.broadcast %cst_68 : f32 to vector<2x32xf32>
    %189 = arith.addf %188, %187 : vector<2x32xf32>
    %190 = arith.divf %188, %189 : vector<2x32xf32>
    %191 = vector.extract_strided_slice %176 {offsets = [0, 32], sizes = [2, 32], strides = [1, 1]} : vector<2x96xf32> to vector<2x32xf32>
    %192 = vector.extract_strided_slice %182 {offsets = [0, 32], sizes = [2, 32], strides = [1, 1]} : vector<2x96xf32> to vector<2x32xf32>
    %193 = arith.addf %191, %192 : vector<2x32xf32>
    %194 = arith.negf %193 : vector<2x32xf32>
    %195 = math.exp %194 : vector<2x32xf32>
    %cst_69 = arith.constant 1.000000e+00 : f32
    %196 = vector.broadcast %cst_69 : f32 to vector<2x32xf32>
    %197 = arith.addf %196, %195 : vector<2x32xf32>
    %198 = arith.divf %196, %197 : vector<2x32xf32>
    %199 = vector.extract_strided_slice %176 {offsets = [0, 64], sizes = [2, 32], strides = [1, 1]} : vector<2x96xf32> to vector<2x32xf32>
    %200 = vector.extract_strided_slice %182 {offsets = [0, 64], sizes = [2, 32], strides = [1, 1]} : vector<2x96xf32> to vector<2x32xf32>
    %201 = arith.mulf %190, %200 : vector<2x32xf32>
    %202 = arith.addf %199, %201 : vector<2x32xf32>
    %203 = math.tanh %202 : vector<2x32xf32>
    %cst_70 = arith.constant 1.000000e+00 : f32
    %204 = vector.broadcast %cst_70 : f32 to vector<2x32xf32>
    %205 = arith.subf %204, %198 : vector<2x32xf32>
    %206 = arith.mulf %205, %203 : vector<2x32xf32>
    %207 = arith.mulf %198, %137 : vector<2x32xf32>
    %208 = arith.addf %206, %207 : vector<2x32xf32>
    %209 = arith.truncf %166 : vector<2x32xf32> to vector<2x32xbf16>
    %cst_71 = arith.constant dense<0.000000e+00> : vector<2x96xf32>
    %210 = tpu.matmul %209, %21, %cst_71 {dimension_numbers = #tpu.dot_dimension_numbers<[1], [0], [0], [1], [0, 0, 1, 1], [], []>} : vector<2x32xbf16>, vector<32x96xbf16>, vector<2x96xf32> -> vector<2x96xf32>
    %211 = arith.addf %210, %29 : vector<2x96xf32>
    %212 = vector.extract_strided_slice %179 {offsets = [0, 0], sizes = [2, 32], strides = [1, 1]} : vector<2x96xf32> to vector<2x32xf32>
    %213 = vector.extract_strided_slice %211 {offsets = [0, 0], sizes = [2, 32], strides = [1, 1]} : vector<2x96xf32> to vector<2x32xf32>
    %214 = arith.addf %212, %213 : vector<2x32xf32>
    %215 = arith.negf %214 : vector<2x32xf32>
    %216 = math.exp %215 : vector<2x32xf32>
    %cst_72 = arith.constant 1.000000e+00 : f32
    %217 = vector.broadcast %cst_72 : f32 to vector<2x32xf32>
    %218 = arith.addf %217, %216 : vector<2x32xf32>
    %219 = arith.divf %217, %218 : vector<2x32xf32>
    %220 = vector.extract_strided_slice %179 {offsets = [0, 32], sizes = [2, 32], strides = [1, 1]} : vector<2x96xf32> to vector<2x32xf32>
    %221 = vector.extract_strided_slice %211 {offsets = [0, 32], sizes = [2, 32], strides = [1, 1]} : vector<2x96xf32> to vector<2x32xf32>
    %222 = arith.addf %220, %221 : vector<2x32xf32>
    %223 = arith.negf %222 : vector<2x32xf32>
    %224 = math.exp %223 : vector<2x32xf32>
    %cst_73 = arith.constant 1.000000e+00 : f32
    %225 = vector.broadcast %cst_73 : f32 to vector<2x32xf32>
    %226 = arith.addf %225, %224 : vector<2x32xf32>
    %227 = arith.divf %225, %226 : vector<2x32xf32>
    %228 = vector.extract_strided_slice %179 {offsets = [0, 64], sizes = [2, 32], strides = [1, 1]} : vector<2x96xf32> to vector<2x32xf32>
    %229 = vector.extract_strided_slice %211 {offsets = [0, 64], sizes = [2, 32], strides = [1, 1]} : vector<2x96xf32> to vector<2x32xf32>
    %230 = arith.mulf %219, %229 : vector<2x32xf32>
    %231 = arith.addf %228, %230 : vector<2x32xf32>
    %232 = math.tanh %231 : vector<2x32xf32>
    %cst_74 = arith.constant 1.000000e+00 : f32
    %233 = vector.broadcast %cst_74 : f32 to vector<2x32xf32>
    %234 = arith.subf %233, %227 : vector<2x32xf32>
    %235 = arith.mulf %234, %232 : vector<2x32xf32>
    %236 = arith.mulf %227, %166 : vector<2x32xf32>
    %237 = arith.addf %235, %236 : vector<2x32xf32>
    %c2_i32_75 = arith.constant 2 : i32
    %238 = arith.muli %c2_i32_61, %c2_i32_75 : i32
    %239 = arith.index_cast %238 : i32 to index
    %c0_76 = arith.constant 0 : index
    %240 = vector.load %arg5[%239, %c0_76] : memref<16x64xf32, #tpu.memory_space<vmem>>, vector<2x32xf32>
    tpu.vector_store %arg5[%239, %c0_76], %208 {strides = array<i32>} : memref<16x64xf32, #tpu.memory_space<vmem>>, vector<2x32xf32>,
    %c2_i32_77 = arith.constant 2 : i32
    %241 = arith.muli %173, %c2_i32_77 : i32
    %242 = arith.index_cast %241 : i32 to index
    %c32_78 = arith.constant 32 : index
    %243 = vector.load %arg5[%242, %c32_78] : memref<16x64xf32, #tpu.memory_space<vmem>>, vector<2x32xf32>
    tpu.vector_store %arg5[%242, %c32_78], %237 {strides = array<i32>} : memref<16x64xf32, #tpu.memory_space<vmem>>, vector<2x32xf32>,
    %c3_i32 = arith.constant 3 : i32
    %c7_i32_79 = arith.constant 7 : i32
    %244 = arith.subi %c7_i32_79, %c3_i32 : i32
    %c2_i32_80 = arith.constant 2 : i32
    %245 = arith.muli %c3_i32, %c2_i32_80 : i32
    %246 = arith.index_cast %245 : i32 to index
    %c0_81 = arith.constant 0 : index
    %247 = vector.load %arg6[%246, %c0_81] : memref<16x96xf32, #tpu.memory_space<vmem>>, vector<2x96xf32>
    %c2_i32_82 = arith.constant 2 : i32
    %248 = arith.muli %244, %c2_i32_82 : i32
    %249 = arith.index_cast %248 : i32 to index
    %c0_83 = arith.constant 0 : index
    %250 = vector.load %arg7[%249, %c0_83] : memref<16x96xf32, #tpu.memory_space<vmem>>, vector<2x96xf32>
    %251 = arith.truncf %208 : vector<2x32xf32> to vector<2x32xbf16>
    %cst_84 = arith.constant dense<0.000000e+00> : vector<2x96xf32>
    %252 = tpu.matmul %251, %19, %cst_84 {dimension_numbers = #tpu.dot_dimension_numbers<[1], [0], [0], [1], [0, 0, 1, 1], [], []>} : vector<2x32xbf16>, vector<32x96xbf16>, vector<2x96xf32> -> vector<2x96xf32>
    %253 = arith.addf %252, %25 : vector<2x96xf32>
    %254 = vector.extract_strided_slice %247 {offsets = [0, 0], sizes = [2, 32], strides = [1, 1]} : vector<2x96xf32> to vector<2x32xf32>
    %255 = vector.extract_strided_slice %253 {offsets = [0, 0], sizes = [2, 32], strides = [1, 1]} : vector<2x96xf32> to vector<2x32xf32>
    %256 = arith.addf %254, %255 : vector<2x32xf32>
    %257 = arith.negf %256 : vector<2x32xf32>
    %258 = math.exp %257 : vector<2x32xf32>
    %cst_85 = arith.constant 1.000000e+00 : f32
    %259 = vector.broadcast %cst_85 : f32 to vector<2x32xf32>
    %260 = arith.addf %259, %258 : vector<2x32xf32>
    %261 = arith.divf %259, %260 : vector<2x32xf32>
    %262 = vector.extract_strided_slice %247 {offsets = [0, 32], sizes = [2, 32], strides = [1, 1]} : vector<2x96xf32> to vector<2x32xf32>
    %263 = vector.extract_strided_slice %253 {offsets = [0, 32], sizes = [2, 32], strides = [1, 1]} : vector<2x96xf32> to vector<2x32xf32>
    %264 = arith.addf %262, %263 : vector<2x32xf32>
    %265 = arith.negf %264 : vector<2x32xf32>
    %266 = math.exp %265 : vector<2x32xf32>
    %cst_86 = arith.constant 1.000000e+00 : f32
    %267 = vector.broadcast %cst_86 : f32 to vector<2x32xf32>
    %268 = arith.addf %267, %266 : vector<2x32xf32>
    %269 = arith.divf %267, %268 : vector<2x32xf32>
    %270 = vector.extract_strided_slice %247 {offsets = [0, 64], sizes = [2, 32], strides = [1, 1]} : vector<2x96xf32> to vector<2x32xf32>
    %271 = vector.extract_strided_slice %253 {offsets = [0, 64], sizes = [2, 32], strides = [1, 1]} : vector<2x96xf32> to vector<2x32xf32>
    %272 = arith.mulf %261, %271 : vector<2x32xf32>
    %273 = arith.addf %270, %272 : vector<2x32xf32>
    %274 = math.tanh %273 : vector<2x32xf32>
    %cst_87 = arith.constant 1.000000e+00 : f32
    %275 = vector.broadcast %cst_87 : f32 to vector<2x32xf32>
    %276 = arith.subf %275, %269 : vector<2x32xf32>
    %277 = arith.mulf %276, %274 : vector<2x32xf32>
    %278 = arith.mulf %269, %208 : vector<2x32xf32>
    %279 = arith.addf %277, %278 : vector<2x32xf32>
    %280 = arith.truncf %237 : vector<2x32xf32> to vector<2x32xbf16>
    %cst_88 = arith.constant dense<0.000000e+00> : vector<2x96xf32>
    %281 = tpu.matmul %280, %21, %cst_88 {dimension_numbers = #tpu.dot_dimension_numbers<[1], [0], [0], [1], [0, 0, 1, 1], [], []>} : vector<2x32xbf16>, vector<32x96xbf16>, vector<2x96xf32> -> vector<2x96xf32>
    %282 = arith.addf %281, %29 : vector<2x96xf32>
    %283 = vector.extract_strided_slice %250 {offsets = [0, 0], sizes = [2, 32], strides = [1, 1]} : vector<2x96xf32> to vector<2x32xf32>
    %284 = vector.extract_strided_slice %282 {offsets = [0, 0], sizes = [2, 32], strides = [1, 1]} : vector<2x96xf32> to vector<2x32xf32>
    %285 = arith.addf %283, %284 : vector<2x32xf32>
    %286 = arith.negf %285 : vector<2x32xf32>
    %287 = math.exp %286 : vector<2x32xf32>
    %cst_89 = arith.constant 1.000000e+00 : f32
    %288 = vector.broadcast %cst_89 : f32 to vector<2x32xf32>
    %289 = arith.addf %288, %287 : vector<2x32xf32>
    %290 = arith.divf %288, %289 : vector<2x32xf32>
    %291 = vector.extract_strided_slice %250 {offsets = [0, 32], sizes = [2, 32], strides = [1, 1]} : vector<2x96xf32> to vector<2x32xf32>
    %292 = vector.extract_strided_slice %282 {offsets = [0, 32], sizes = [2, 32], strides = [1, 1]} : vector<2x96xf32> to vector<2x32xf32>
    %293 = arith.addf %291, %292 : vector<2x32xf32>
    %294 = arith.negf %293 : vector<2x32xf32>
    %295 = math.exp %294 : vector<2x32xf32>
    %cst_90 = arith.constant 1.000000e+00 : f32
    %296 = vector.broadcast %cst_90 : f32 to vector<2x32xf32>
    %297 = arith.addf %296, %295 : vector<2x32xf32>
    %298 = arith.divf %296, %297 : vector<2x32xf32>
    %299 = vector.extract_strided_slice %250 {offsets = [0, 64], sizes = [2, 32], strides = [1, 1]} : vector<2x96xf32> to vector<2x32xf32>
    %300 = vector.extract_strided_slice %282 {offsets = [0, 64], sizes = [2, 32], strides = [1, 1]} : vector<2x96xf32> to vector<2x32xf32>
    %301 = arith.mulf %290, %300 : vector<2x32xf32>
    %302 = arith.addf %299, %301 : vector<2x32xf32>
    %303 = math.tanh %302 : vector<2x32xf32>
    %cst_91 = arith.constant 1.000000e+00 : f32
    %304 = vector.broadcast %cst_91 : f32 to vector<2x32xf32>
    %305 = arith.subf %304, %298 : vector<2x32xf32>
    %306 = arith.mulf %305, %303 : vector<2x32xf32>
    %307 = arith.mulf %298, %237 : vector<2x32xf32>
    %308 = arith.addf %306, %307 : vector<2x32xf32>
    %c2_i32_92 = arith.constant 2 : i32
    %309 = arith.muli %c3_i32, %c2_i32_92 : i32
    %310 = arith.index_cast %309 : i32 to index
    %c0_93 = arith.constant 0 : index
    %311 = vector.load %arg5[%310, %c0_93] : memref<16x64xf32, #tpu.memory_space<vmem>>, vector<2x32xf32>
    tpu.vector_store %arg5[%310, %c0_93], %279 {strides = array<i32>} : memref<16x64xf32, #tpu.memory_space<vmem>>, vector<2x32xf32>,
    %c2_i32_94 = arith.constant 2 : i32
    %312 = arith.muli %244, %c2_i32_94 : i32
    %313 = arith.index_cast %312 : i32 to index
    %c32_95 = arith.constant 32 : index
    %314 = vector.load %arg5[%313, %c32_95] : memref<16x64xf32, #tpu.memory_space<vmem>>, vector<2x32xf32>
    tpu.vector_store %arg5[%313, %c32_95], %308 {strides = array<i32>} : memref<16x64xf32, #tpu.memory_space<vmem>>, vector<2x32xf32>,
    %c4_i32 = arith.constant 4 : i32
    %c7_i32_96 = arith.constant 7 : i32
    %315 = arith.subi %c7_i32_96, %c4_i32 : i32
    %c2_i32_97 = arith.constant 2 : i32
    %316 = arith.muli %c4_i32, %c2_i32_97 : i32
    %317 = arith.index_cast %316 : i32 to index
    %c0_98 = arith.constant 0 : index
    %318 = vector.load %arg6[%317, %c0_98] : memref<16x96xf32, #tpu.memory_space<vmem>>, vector<2x96xf32>
    %c2_i32_99 = arith.constant 2 : i32
    %319 = arith.muli %315, %c2_i32_99 : i32
    %320 = arith.index_cast %319 : i32 to index
    %c0_100 = arith.constant 0 : index
    %321 = vector.load %arg7[%320, %c0_100] : memref<16x96xf32, #tpu.memory_space<vmem>>, vector<2x96xf32>
    %322 = arith.truncf %279 : vector<2x32xf32> to vector<2x32xbf16>
    %cst_101 = arith.constant dense<0.000000e+00> : vector<2x96xf32>
    %323 = tpu.matmul %322, %19, %cst_101 {dimension_numbers = #tpu.dot_dimension_numbers<[1], [0], [0], [1], [0, 0, 1, 1], [], []>} : vector<2x32xbf16>, vector<32x96xbf16>, vector<2x96xf32> -> vector<2x96xf32>
    %324 = arith.addf %323, %25 : vector<2x96xf32>
    %325 = vector.extract_strided_slice %318 {offsets = [0, 0], sizes = [2, 32], strides = [1, 1]} : vector<2x96xf32> to vector<2x32xf32>
    %326 = vector.extract_strided_slice %324 {offsets = [0, 0], sizes = [2, 32], strides = [1, 1]} : vector<2x96xf32> to vector<2x32xf32>
    %327 = arith.addf %325, %326 : vector<2x32xf32>
    %328 = arith.negf %327 : vector<2x32xf32>
    %329 = math.exp %328 : vector<2x32xf32>
    %cst_102 = arith.constant 1.000000e+00 : f32
    %330 = vector.broadcast %cst_102 : f32 to vector<2x32xf32>
    %331 = arith.addf %330, %329 : vector<2x32xf32>
    %332 = arith.divf %330, %331 : vector<2x32xf32>
    %333 = vector.extract_strided_slice %318 {offsets = [0, 32], sizes = [2, 32], strides = [1, 1]} : vector<2x96xf32> to vector<2x32xf32>
    %334 = vector.extract_strided_slice %324 {offsets = [0, 32], sizes = [2, 32], strides = [1, 1]} : vector<2x96xf32> to vector<2x32xf32>
    %335 = arith.addf %333, %334 : vector<2x32xf32>
    %336 = arith.negf %335 : vector<2x32xf32>
    %337 = math.exp %336 : vector<2x32xf32>
    %cst_103 = arith.constant 1.000000e+00 : f32
    %338 = vector.broadcast %cst_103 : f32 to vector<2x32xf32>
    %339 = arith.addf %338, %337 : vector<2x32xf32>
    %340 = arith.divf %338, %339 : vector<2x32xf32>
    %341 = vector.extract_strided_slice %318 {offsets = [0, 64], sizes = [2, 32], strides = [1, 1]} : vector<2x96xf32> to vector<2x32xf32>
    %342 = vector.extract_strided_slice %324 {offsets = [0, 64], sizes = [2, 32], strides = [1, 1]} : vector<2x96xf32> to vector<2x32xf32>
    %343 = arith.mulf %332, %342 : vector<2x32xf32>
    %344 = arith.addf %341, %343 : vector<2x32xf32>
    %345 = math.tanh %344 : vector<2x32xf32>
    %cst_104 = arith.constant 1.000000e+00 : f32
    %346 = vector.broadcast %cst_104 : f32 to vector<2x32xf32>
    %347 = arith.subf %346, %340 : vector<2x32xf32>
    %348 = arith.mulf %347, %345 : vector<2x32xf32>
    %349 = arith.mulf %340, %279 : vector<2x32xf32>
    %350 = arith.addf %348, %349 : vector<2x32xf32>
    %351 = arith.truncf %308 : vector<2x32xf32> to vector<2x32xbf16>
    %cst_105 = arith.constant dense<0.000000e+00> : vector<2x96xf32>
    %352 = tpu.matmul %351, %21, %cst_105 {dimension_numbers = #tpu.dot_dimension_numbers<[1], [0], [0], [1], [0, 0, 1, 1], [], []>} : vector<2x32xbf16>, vector<32x96xbf16>, vector<2x96xf32> -> vector<2x96xf32>
    %353 = arith.addf %352, %29 : vector<2x96xf32>
    %354 = vector.extract_strided_slice %321 {offsets = [0, 0], sizes = [2, 32], strides = [1, 1]} : vector<2x96xf32> to vector<2x32xf32>
    %355 = vector.extract_strided_slice %353 {offsets = [0, 0], sizes = [2, 32], strides = [1, 1]} : vector<2x96xf32> to vector<2x32xf32>
    %356 = arith.addf %354, %355 : vector<2x32xf32>
    %357 = arith.negf %356 : vector<2x32xf32>
    %358 = math.exp %357 : vector<2x32xf32>
    %cst_106 = arith.constant 1.000000e+00 : f32
    %359 = vector.broadcast %cst_106 : f32 to vector<2x32xf32>
    %360 = arith.addf %359, %358 : vector<2x32xf32>
    %361 = arith.divf %359, %360 : vector<2x32xf32>
    %362 = vector.extract_strided_slice %321 {offsets = [0, 32], sizes = [2, 32], strides = [1, 1]} : vector<2x96xf32> to vector<2x32xf32>
    %363 = vector.extract_strided_slice %353 {offsets = [0, 32], sizes = [2, 32], strides = [1, 1]} : vector<2x96xf32> to vector<2x32xf32>
    %364 = arith.addf %362, %363 : vector<2x32xf32>
    %365 = arith.negf %364 : vector<2x32xf32>
    %366 = math.exp %365 : vector<2x32xf32>
    %cst_107 = arith.constant 1.000000e+00 : f32
    %367 = vector.broadcast %cst_107 : f32 to vector<2x32xf32>
    %368 = arith.addf %367, %366 : vector<2x32xf32>
    %369 = arith.divf %367, %368 : vector<2x32xf32>
    %370 = vector.extract_strided_slice %321 {offsets = [0, 64], sizes = [2, 32], strides = [1, 1]} : vector<2x96xf32> to vector<2x32xf32>
    %371 = vector.extract_strided_slice %353 {offsets = [0, 64], sizes = [2, 32], strides = [1, 1]} : vector<2x96xf32> to vector<2x32xf32>
    %372 = arith.mulf %361, %371 : vector<2x32xf32>
    %373 = arith.addf %370, %372 : vector<2x32xf32>
    %374 = math.tanh %373 : vector<2x32xf32>
    %cst_108 = arith.constant 1.000000e+00 : f32
    %375 = vector.broadcast %cst_108 : f32 to vector<2x32xf32>
    %376 = arith.subf %375, %369 : vector<2x32xf32>
    %377 = arith.mulf %376, %374 : vector<2x32xf32>
    %378 = arith.mulf %369, %308 : vector<2x32xf32>
    %379 = arith.addf %377, %378 : vector<2x32xf32>
    %c2_i32_109 = arith.constant 2 : i32
    %380 = arith.muli %c4_i32, %c2_i32_109 : i32
    %381 = arith.index_cast %380 : i32 to index
    %c0_110 = arith.constant 0 : index
    %382 = vector.load %arg5[%381, %c0_110] : memref<16x64xf32, #tpu.memory_space<vmem>>, vector<2x32xf32>
    tpu.vector_store %arg5[%381, %c0_110], %350 {strides = array<i32>} : memref<16x64xf32, #tpu.memory_space<vmem>>, vector<2x32xf32>,
    %c2_i32_111 = arith.constant 2 : i32
    %383 = arith.muli %315, %c2_i32_111 : i32
    %384 = arith.index_cast %383 : i32 to index
    %c32_112 = arith.constant 32 : index
    %385 = vector.load %arg5[%384, %c32_112] : memref<16x64xf32, #tpu.memory_space<vmem>>, vector<2x32xf32>
    tpu.vector_store %arg5[%384, %c32_112], %379 {strides = array<i32>} : memref<16x64xf32, #tpu.memory_space<vmem>>, vector<2x32xf32>,
    %c5_i32 = arith.constant 5 : i32
    %c7_i32_113 = arith.constant 7 : i32
    %386 = arith.subi %c7_i32_113, %c5_i32 : i32
    %c2_i32_114 = arith.constant 2 : i32
    %387 = arith.muli %c5_i32, %c2_i32_114 : i32
    %388 = arith.index_cast %387 : i32 to index
    %c0_115 = arith.constant 0 : index
    %389 = vector.load %arg6[%388, %c0_115] : memref<16x96xf32, #tpu.memory_space<vmem>>, vector<2x96xf32>
    %c2_i32_116 = arith.constant 2 : i32
    %390 = arith.muli %386, %c2_i32_116 : i32
    %391 = arith.index_cast %390 : i32 to index
    %c0_117 = arith.constant 0 : index
    %392 = vector.load %arg7[%391, %c0_117] : memref<16x96xf32, #tpu.memory_space<vmem>>, vector<2x96xf32>
    %393 = arith.truncf %350 : vector<2x32xf32> to vector<2x32xbf16>
    %cst_118 = arith.constant dense<0.000000e+00> : vector<2x96xf32>
    %394 = tpu.matmul %393, %19, %cst_118 {dimension_numbers = #tpu.dot_dimension_numbers<[1], [0], [0], [1], [0, 0, 1, 1], [], []>} : vector<2x32xbf16>, vector<32x96xbf16>, vector<2x96xf32> -> vector<2x96xf32>
    %395 = arith.addf %394, %25 : vector<2x96xf32>
    %396 = vector.extract_strided_slice %389 {offsets = [0, 0], sizes = [2, 32], strides = [1, 1]} : vector<2x96xf32> to vector<2x32xf32>
    %397 = vector.extract_strided_slice %395 {offsets = [0, 0], sizes = [2, 32], strides = [1, 1]} : vector<2x96xf32> to vector<2x32xf32>
    %398 = arith.addf %396, %397 : vector<2x32xf32>
    %399 = arith.negf %398 : vector<2x32xf32>
    %400 = math.exp %399 : vector<2x32xf32>
    %cst_119 = arith.constant 1.000000e+00 : f32
    %401 = vector.broadcast %cst_119 : f32 to vector<2x32xf32>
    %402 = arith.addf %401, %400 : vector<2x32xf32>
    %403 = arith.divf %401, %402 : vector<2x32xf32>
    %404 = vector.extract_strided_slice %389 {offsets = [0, 32], sizes = [2, 32], strides = [1, 1]} : vector<2x96xf32> to vector<2x32xf32>
    %405 = vector.extract_strided_slice %395 {offsets = [0, 32], sizes = [2, 32], strides = [1, 1]} : vector<2x96xf32> to vector<2x32xf32>
    %406 = arith.addf %404, %405 : vector<2x32xf32>
    %407 = arith.negf %406 : vector<2x32xf32>
    %408 = math.exp %407 : vector<2x32xf32>
    %cst_120 = arith.constant 1.000000e+00 : f32
    %409 = vector.broadcast %cst_120 : f32 to vector<2x32xf32>
    %410 = arith.addf %409, %408 : vector<2x32xf32>
    %411 = arith.divf %409, %410 : vector<2x32xf32>
    %412 = vector.extract_strided_slice %389 {offsets = [0, 64], sizes = [2, 32], strides = [1, 1]} : vector<2x96xf32> to vector<2x32xf32>
    %413 = vector.extract_strided_slice %395 {offsets = [0, 64], sizes = [2, 32], strides = [1, 1]} : vector<2x96xf32> to vector<2x32xf32>
    %414 = arith.mulf %403, %413 : vector<2x32xf32>
    %415 = arith.addf %412, %414 : vector<2x32xf32>
    %416 = math.tanh %415 : vector<2x32xf32>
    %cst_121 = arith.constant 1.000000e+00 : f32
    %417 = vector.broadcast %cst_121 : f32 to vector<2x32xf32>
    %418 = arith.subf %417, %411 : vector<2x32xf32>
    %419 = arith.mulf %418, %416 : vector<2x32xf32>
    %420 = arith.mulf %411, %350 : vector<2x32xf32>
    %421 = arith.addf %419, %420 : vector<2x32xf32>
    %422 = arith.truncf %379 : vector<2x32xf32> to vector<2x32xbf16>
    %cst_122 = arith.constant dense<0.000000e+00> : vector<2x96xf32>
    %423 = tpu.matmul %422, %21, %cst_122 {dimension_numbers = #tpu.dot_dimension_numbers<[1], [0], [0], [1], [0, 0, 1, 1], [], []>} : vector<2x32xbf16>, vector<32x96xbf16>, vector<2x96xf32> -> vector<2x96xf32>
    %424 = arith.addf %423, %29 : vector<2x96xf32>
    %425 = vector.extract_strided_slice %392 {offsets = [0, 0], sizes = [2, 32], strides = [1, 1]} : vector<2x96xf32> to vector<2x32xf32>
    %426 = vector.extract_strided_slice %424 {offsets = [0, 0], sizes = [2, 32], strides = [1, 1]} : vector<2x96xf32> to vector<2x32xf32>
    %427 = arith.addf %425, %426 : vector<2x32xf32>
    %428 = arith.negf %427 : vector<2x32xf32>
    %429 = math.exp %428 : vector<2x32xf32>
    %cst_123 = arith.constant 1.000000e+00 : f32
    %430 = vector.broadcast %cst_123 : f32 to vector<2x32xf32>
    %431 = arith.addf %430, %429 : vector<2x32xf32>
    %432 = arith.divf %430, %431 : vector<2x32xf32>
    %433 = vector.extract_strided_slice %392 {offsets = [0, 32], sizes = [2, 32], strides = [1, 1]} : vector<2x96xf32> to vector<2x32xf32>
    %434 = vector.extract_strided_slice %424 {offsets = [0, 32], sizes = [2, 32], strides = [1, 1]} : vector<2x96xf32> to vector<2x32xf32>
    %435 = arith.addf %433, %434 : vector<2x32xf32>
    %436 = arith.negf %435 : vector<2x32xf32>
    %437 = math.exp %436 : vector<2x32xf32>
    %cst_124 = arith.constant 1.000000e+00 : f32
    %438 = vector.broadcast %cst_124 : f32 to vector<2x32xf32>
    %439 = arith.addf %438, %437 : vector<2x32xf32>
    %440 = arith.divf %438, %439 : vector<2x32xf32>
    %441 = vector.extract_strided_slice %392 {offsets = [0, 64], sizes = [2, 32], strides = [1, 1]} : vector<2x96xf32> to vector<2x32xf32>
    %442 = vector.extract_strided_slice %424 {offsets = [0, 64], sizes = [2, 32], strides = [1, 1]} : vector<2x96xf32> to vector<2x32xf32>
    %443 = arith.mulf %432, %442 : vector<2x32xf32>
    %444 = arith.addf %441, %443 : vector<2x32xf32>
    %445 = math.tanh %444 : vector<2x32xf32>
    %cst_125 = arith.constant 1.000000e+00 : f32
    %446 = vector.broadcast %cst_125 : f32 to vector<2x32xf32>
    %447 = arith.subf %446, %440 : vector<2x32xf32>
    %448 = arith.mulf %447, %445 : vector<2x32xf32>
    %449 = arith.mulf %440, %379 : vector<2x32xf32>
    %450 = arith.addf %448, %449 : vector<2x32xf32>
    %c2_i32_126 = arith.constant 2 : i32
    %451 = arith.muli %c5_i32, %c2_i32_126 : i32
    %452 = arith.index_cast %451 : i32 to index
    %c0_127 = arith.constant 0 : index
    %453 = vector.load %arg5[%452, %c0_127] : memref<16x64xf32, #tpu.memory_space<vmem>>, vector<2x32xf32>
    tpu.vector_store %arg5[%452, %c0_127], %421 {strides = array<i32>} : memref<16x64xf32, #tpu.memory_space<vmem>>, vector<2x32xf32>,
    %c2_i32_128 = arith.constant 2 : i32
    %454 = arith.muli %386, %c2_i32_128 : i32
    %455 = arith.index_cast %454 : i32 to index
    %c32_129 = arith.constant 32 : index
    %456 = vector.load %arg5[%455, %c32_129] : memref<16x64xf32, #tpu.memory_space<vmem>>, vector<2x32xf32>
    tpu.vector_store %arg5[%455, %c32_129], %450 {strides = array<i32>} : memref<16x64xf32, #tpu.memory_space<vmem>>, vector<2x32xf32>,
    %c6_i32 = arith.constant 6 : i32
    %c7_i32_130 = arith.constant 7 : i32
    %457 = arith.subi %c7_i32_130, %c6_i32 : i32
    %c2_i32_131 = arith.constant 2 : i32
    %458 = arith.muli %c6_i32, %c2_i32_131 : i32
    %459 = arith.index_cast %458 : i32 to index
    %c0_132 = arith.constant 0 : index
    %460 = vector.load %arg6[%459, %c0_132] : memref<16x96xf32, #tpu.memory_space<vmem>>, vector<2x96xf32>
    %c2_i32_133 = arith.constant 2 : i32
    %461 = arith.muli %457, %c2_i32_133 : i32
    %462 = arith.index_cast %461 : i32 to index
    %c0_134 = arith.constant 0 : index
    %463 = vector.load %arg7[%462, %c0_134] : memref<16x96xf32, #tpu.memory_space<vmem>>, vector<2x96xf32>
    %464 = arith.truncf %421 : vector<2x32xf32> to vector<2x32xbf16>
    %cst_135 = arith.constant dense<0.000000e+00> : vector<2x96xf32>
    %465 = tpu.matmul %464, %19, %cst_135 {dimension_numbers = #tpu.dot_dimension_numbers<[1], [0], [0], [1], [0, 0, 1, 1], [], []>} : vector<2x32xbf16>, vector<32x96xbf16>, vector<2x96xf32> -> vector<2x96xf32>
    %466 = arith.addf %465, %25 : vector<2x96xf32>
    %467 = vector.extract_strided_slice %460 {offsets = [0, 0], sizes = [2, 32], strides = [1, 1]} : vector<2x96xf32> to vector<2x32xf32>
    %468 = vector.extract_strided_slice %466 {offsets = [0, 0], sizes = [2, 32], strides = [1, 1]} : vector<2x96xf32> to vector<2x32xf32>
    %469 = arith.addf %467, %468 : vector<2x32xf32>
    %470 = arith.negf %469 : vector<2x32xf32>
    %471 = math.exp %470 : vector<2x32xf32>
    %cst_136 = arith.constant 1.000000e+00 : f32
    %472 = vector.broadcast %cst_136 : f32 to vector<2x32xf32>
    %473 = arith.addf %472, %471 : vector<2x32xf32>
    %474 = arith.divf %472, %473 : vector<2x32xf32>
    %475 = vector.extract_strided_slice %460 {offsets = [0, 32], sizes = [2, 32], strides = [1, 1]} : vector<2x96xf32> to vector<2x32xf32>
    %476 = vector.extract_strided_slice %466 {offsets = [0, 32], sizes = [2, 32], strides = [1, 1]} : vector<2x96xf32> to vector<2x32xf32>
    %477 = arith.addf %475, %476 : vector<2x32xf32>
    %478 = arith.negf %477 : vector<2x32xf32>
    %479 = math.exp %478 : vector<2x32xf32>
    %cst_137 = arith.constant 1.000000e+00 : f32
    %480 = vector.broadcast %cst_137 : f32 to vector<2x32xf32>
    %481 = arith.addf %480, %479 : vector<2x32xf32>
    %482 = arith.divf %480, %481 : vector<2x32xf32>
    %483 = vector.extract_strided_slice %460 {offsets = [0, 64], sizes = [2, 32], strides = [1, 1]} : vector<2x96xf32> to vector<2x32xf32>
    %484 = vector.extract_strided_slice %466 {offsets = [0, 64], sizes = [2, 32], strides = [1, 1]} : vector<2x96xf32> to vector<2x32xf32>
    %485 = arith.mulf %474, %484 : vector<2x32xf32>
    %486 = arith.addf %483, %485 : vector<2x32xf32>
    %487 = math.tanh %486 : vector<2x32xf32>
    %cst_138 = arith.constant 1.000000e+00 : f32
    %488 = vector.broadcast %cst_138 : f32 to vector<2x32xf32>
    %489 = arith.subf %488, %482 : vector<2x32xf32>
    %490 = arith.mulf %489, %487 : vector<2x32xf32>
    %491 = arith.mulf %482, %421 : vector<2x32xf32>
    %492 = arith.addf %490, %491 : vector<2x32xf32>
    %493 = arith.truncf %450 : vector<2x32xf32> to vector<2x32xbf16>
    %cst_139 = arith.constant dense<0.000000e+00> : vector<2x96xf32>
    %494 = tpu.matmul %493, %21, %cst_139 {dimension_numbers = #tpu.dot_dimension_numbers<[1], [0], [0], [1], [0, 0, 1, 1], [], []>} : vector<2x32xbf16>, vector<32x96xbf16>, vector<2x96xf32> -> vector<2x96xf32>
    %495 = arith.addf %494, %29 : vector<2x96xf32>
    %496 = vector.extract_strided_slice %463 {offsets = [0, 0], sizes = [2, 32], strides = [1, 1]} : vector<2x96xf32> to vector<2x32xf32>
    %497 = vector.extract_strided_slice %495 {offsets = [0, 0], sizes = [2, 32], strides = [1, 1]} : vector<2x96xf32> to vector<2x32xf32>
    %498 = arith.addf %496, %497 : vector<2x32xf32>
    %499 = arith.negf %498 : vector<2x32xf32>
    %500 = math.exp %499 : vector<2x32xf32>
    %cst_140 = arith.constant 1.000000e+00 : f32
    %501 = vector.broadcast %cst_140 : f32 to vector<2x32xf32>
    %502 = arith.addf %501, %500 : vector<2x32xf32>
    %503 = arith.divf %501, %502 : vector<2x32xf32>
    %504 = vector.extract_strided_slice %463 {offsets = [0, 32], sizes = [2, 32], strides = [1, 1]} : vector<2x96xf32> to vector<2x32xf32>
    %505 = vector.extract_strided_slice %495 {offsets = [0, 32], sizes = [2, 32], strides = [1, 1]} : vector<2x96xf32> to vector<2x32xf32>
    %506 = arith.addf %504, %505 : vector<2x32xf32>
    %507 = arith.negf %506 : vector<2x32xf32>
    %508 = math.exp %507 : vector<2x32xf32>
    %cst_141 = arith.constant 1.000000e+00 : f32
    %509 = vector.broadcast %cst_141 : f32 to vector<2x32xf32>
    %510 = arith.addf %509, %508 : vector<2x32xf32>
    %511 = arith.divf %509, %510 : vector<2x32xf32>
    %512 = vector.extract_strided_slice %463 {offsets = [0, 64], sizes = [2, 32], strides = [1, 1]} : vector<2x96xf32> to vector<2x32xf32>
    %513 = vector.extract_strided_slice %495 {offsets = [0, 64], sizes = [2, 32], strides = [1, 1]} : vector<2x96xf32> to vector<2x32xf32>
    %514 = arith.mulf %503, %513 : vector<2x32xf32>
    %515 = arith.addf %512, %514 : vector<2x32xf32>
    %516 = math.tanh %515 : vector<2x32xf32>
    %cst_142 = arith.constant 1.000000e+00 : f32
    %517 = vector.broadcast %cst_142 : f32 to vector<2x32xf32>
    %518 = arith.subf %517, %511 : vector<2x32xf32>
    %519 = arith.mulf %518, %516 : vector<2x32xf32>
    %520 = arith.mulf %511, %450 : vector<2x32xf32>
    %521 = arith.addf %519, %520 : vector<2x32xf32>
    %c2_i32_143 = arith.constant 2 : i32
    %522 = arith.muli %c6_i32, %c2_i32_143 : i32
    %523 = arith.index_cast %522 : i32 to index
    %c0_144 = arith.constant 0 : index
    %524 = vector.load %arg5[%523, %c0_144] : memref<16x64xf32, #tpu.memory_space<vmem>>, vector<2x32xf32>
    tpu.vector_store %arg5[%523, %c0_144], %492 {strides = array<i32>} : memref<16x64xf32, #tpu.memory_space<vmem>>, vector<2x32xf32>,
    %c2_i32_145 = arith.constant 2 : i32
    %525 = arith.muli %457, %c2_i32_145 : i32
    %526 = arith.index_cast %525 : i32 to index
    %c32_146 = arith.constant 32 : index
    %527 = vector.load %arg5[%526, %c32_146] : memref<16x64xf32, #tpu.memory_space<vmem>>, vector<2x32xf32>
    tpu.vector_store %arg5[%526, %c32_146], %521 {strides = array<i32>} : memref<16x64xf32, #tpu.memory_space<vmem>>, vector<2x32xf32>,
    %c7_i32_147 = arith.constant 7 : i32
    %c7_i32_148 = arith.constant 7 : i32
    %528 = arith.subi %c7_i32_148, %c7_i32_147 : i32
    %c2_i32_149 = arith.constant 2 : i32
    %529 = arith.muli %c7_i32_147, %c2_i32_149 : i32
    %530 = arith.index_cast %529 : i32 to index
    %c0_150 = arith.constant 0 : index
    %531 = vector.load %arg6[%530, %c0_150] : memref<16x96xf32, #tpu.memory_space<vmem>>, vector<2x96xf32>
    %c2_i32_151 = arith.constant 2 : i32
    %532 = arith.muli %528, %c2_i32_151 : i32
    %533 = arith.index_cast %532 : i32 to index
    %c0_152 = arith.constant 0 : index
    %534 = vector.load %arg7[%533, %c0_152] : memref<16x96xf32, #tpu.memory_space<vmem>>, vector<2x96xf32>
    %535 = arith.truncf %492 : vector<2x32xf32> to vector<2x32xbf16>
    %cst_153 = arith.constant dense<0.000000e+00> : vector<2x96xf32>
    %536 = tpu.matmul %535, %19, %cst_153 {dimension_numbers = #tpu.dot_dimension_numbers<[1], [0], [0], [1], [0, 0, 1, 1], [], []>} : vector<2x32xbf16>, vector<32x96xbf16>, vector<2x96xf32> -> vector<2x96xf32>
    %537 = arith.addf %536, %25 : vector<2x96xf32>
    %538 = vector.extract_strided_slice %531 {offsets = [0, 0], sizes = [2, 32], strides = [1, 1]} : vector<2x96xf32> to vector<2x32xf32>
    %539 = vector.extract_strided_slice %537 {offsets = [0, 0], sizes = [2, 32], strides = [1, 1]} : vector<2x96xf32> to vector<2x32xf32>
    %540 = arith.addf %538, %539 : vector<2x32xf32>
    %541 = arith.negf %540 : vector<2x32xf32>
    %542 = math.exp %541 : vector<2x32xf32>
    %cst_154 = arith.constant 1.000000e+00 : f32
    %543 = vector.broadcast %cst_154 : f32 to vector<2x32xf32>
    %544 = arith.addf %543, %542 : vector<2x32xf32>
    %545 = arith.divf %543, %544 : vector<2x32xf32>
    %546 = vector.extract_strided_slice %531 {offsets = [0, 32], sizes = [2, 32], strides = [1, 1]} : vector<2x96xf32> to vector<2x32xf32>
    %547 = vector.extract_strided_slice %537 {offsets = [0, 32], sizes = [2, 32], strides = [1, 1]} : vector<2x96xf32> to vector<2x32xf32>
    %548 = arith.addf %546, %547 : vector<2x32xf32>
    %549 = arith.negf %548 : vector<2x32xf32>
    %550 = math.exp %549 : vector<2x32xf32>
    %cst_155 = arith.constant 1.000000e+00 : f32
    %551 = vector.broadcast %cst_155 : f32 to vector<2x32xf32>
    %552 = arith.addf %551, %550 : vector<2x32xf32>
    %553 = arith.divf %551, %552 : vector<2x32xf32>
    %554 = vector.extract_strided_slice %531 {offsets = [0, 64], sizes = [2, 32], strides = [1, 1]} : vector<2x96xf32> to vector<2x32xf32>
    %555 = vector.extract_strided_slice %537 {offsets = [0, 64], sizes = [2, 32], strides = [1, 1]} : vector<2x96xf32> to vector<2x32xf32>
    %556 = arith.mulf %545, %555 : vector<2x32xf32>
    %557 = arith.addf %554, %556 : vector<2x32xf32>
    %558 = math.tanh %557 : vector<2x32xf32>
    %cst_156 = arith.constant 1.000000e+00 : f32
    %559 = vector.broadcast %cst_156 : f32 to vector<2x32xf32>
    %560 = arith.subf %559, %553 : vector<2x32xf32>
    %561 = arith.mulf %560, %558 : vector<2x32xf32>
    %562 = arith.mulf %553, %492 : vector<2x32xf32>
    %563 = arith.addf %561, %562 : vector<2x32xf32>
    %564 = arith.truncf %521 : vector<2x32xf32> to vector<2x32xbf16>
    %cst_157 = arith.constant dense<0.000000e+00> : vector<2x96xf32>
    %565 = tpu.matmul %564, %21, %cst_157 {dimension_numbers = #tpu.dot_dimension_numbers<[1], [0], [0], [1], [0, 0, 1, 1], [], []>} : vector<2x32xbf16>, vector<32x96xbf16>, vector<2x96xf32> -> vector<2x96xf32>
    %566 = arith.addf %565, %29 : vector<2x96xf32>
    %567 = vector.extract_strided_slice %534 {offsets = [0, 0], sizes = [2, 32], strides = [1, 1]} : vector<2x96xf32> to vector<2x32xf32>
    %568 = vector.extract_strided_slice %566 {offsets = [0, 0], sizes = [2, 32], strides = [1, 1]} : vector<2x96xf32> to vector<2x32xf32>
    %569 = arith.addf %567, %568 : vector<2x32xf32>
    %570 = arith.negf %569 : vector<2x32xf32>
    %571 = math.exp %570 : vector<2x32xf32>
    %cst_158 = arith.constant 1.000000e+00 : f32
    %572 = vector.broadcast %cst_158 : f32 to vector<2x32xf32>
    %573 = arith.addf %572, %571 : vector<2x32xf32>
    %574 = arith.divf %572, %573 : vector<2x32xf32>
    %575 = vector.extract_strided_slice %534 {offsets = [0, 32], sizes = [2, 32], strides = [1, 1]} : vector<2x96xf32> to vector<2x32xf32>
    %576 = vector.extract_strided_slice %566 {offsets = [0, 32], sizes = [2, 32], strides = [1, 1]} : vector<2x96xf32> to vector<2x32xf32>
    %577 = arith.addf %575, %576 : vector<2x32xf32>
    %578 = arith.negf %577 : vector<2x32xf32>
    %579 = math.exp %578 : vector<2x32xf32>
    %cst_159 = arith.constant 1.000000e+00 : f32
    %580 = vector.broadcast %cst_159 : f32 to vector<2x32xf32>
    %581 = arith.addf %580, %579 : vector<2x32xf32>
    %582 = arith.divf %580, %581 : vector<2x32xf32>
    %583 = vector.extract_strided_slice %534 {offsets = [0, 64], sizes = [2, 32], strides = [1, 1]} : vector<2x96xf32> to vector<2x32xf32>
    %584 = vector.extract_strided_slice %566 {offsets = [0, 64], sizes = [2, 32], strides = [1, 1]} : vector<2x96xf32> to vector<2x32xf32>
    %585 = arith.mulf %574, %584 : vector<2x32xf32>
    %586 = arith.addf %583, %585 : vector<2x32xf32>
    %587 = math.tanh %586 : vector<2x32xf32>
    %cst_160 = arith.constant 1.000000e+00 : f32
    %588 = vector.broadcast %cst_160 : f32 to vector<2x32xf32>
    %589 = arith.subf %588, %582 : vector<2x32xf32>
    %590 = arith.mulf %589, %587 : vector<2x32xf32>
    %591 = arith.mulf %582, %521 : vector<2x32xf32>
    %592 = arith.addf %590, %591 : vector<2x32xf32>
    %c2_i32_161 = arith.constant 2 : i32
    %593 = arith.muli %c7_i32_147, %c2_i32_161 : i32
    %594 = arith.index_cast %593 : i32 to index
    %c0_162 = arith.constant 0 : index
    %595 = vector.load %arg5[%594, %c0_162] : memref<16x64xf32, #tpu.memory_space<vmem>>, vector<2x32xf32>
    tpu.vector_store %arg5[%594, %c0_162], %563 {strides = array<i32>} : memref<16x64xf32, #tpu.memory_space<vmem>>, vector<2x32xf32>,
    %c2_i32_163 = arith.constant 2 : i32
    %596 = arith.muli %528, %c2_i32_163 : i32
    %597 = arith.index_cast %596 : i32 to index
    %c32_164 = arith.constant 32 : index
    %598 = vector.load %arg5[%597, %c32_164] : memref<16x64xf32, #tpu.memory_space<vmem>>, vector<2x32xf32>
    tpu.vector_store %arg5[%597, %c32_164], %592 {strides = array<i32>} : memref<16x64xf32, #tpu.memory_space<vmem>>, vector<2x32xf32>,
    %c8_i32 = arith.constant 8 : i32
    return
  }
}

</mosaic_0001>

<bundles_post_ra>
// kernel: tpu_custom_call.1
= control target key start
LH: loop header
LB: loop body
LE: loop exit
PB: predicated region body
PF: predicated region fallthrough
CT: control target
= control target key end

     0   :  { %10 = vsyncpa [#allocation5], 0  ;;  %s2355_s0 = inlined_call_operand.hbm [shape: f32[16,16], index: 0, kind: input, shape index: {}]   ;;  %s2356_s1 = inlined_call_operand.hbm [shape: bf16[2,16,96], index: 1, kind: input, shape index: {}]   ;;  %s2357_s2 = inlined_call_operand.hbm [shape: bf16[2,32,96], index: 2, kind: input, shape index: {}]   ;;  %s2358_s3 = inlined_call_operand.vmem [shape: f32[2,1,96], index: 3, kind: input, shape index: {}]   ;;  %s2359_s4 = inlined_call_operand.vmem [shape: f32[2,1,96], index: 4, kind: input, shape index: {}]   ;;  %s2360_s5 = inlined_call_operand.hbm [shape: f32[16,64], index: 5, kind: output, shape index: {}]  }
   0x1   :  { %11 = vsyncpa [#allocation8], 0 }
   0x2   :  { %12 = vsyncpa [#allocation6], 0  ;;  %s1923_s18 = smov [#allocation7]   ;;  %s1829_s22 = scalar_lea.hbm %s2356_s1, 256 }
   0x3   :  { %s30_s19 = sshll.u32 %s1923_s18, 4  ;;  %p1830_p0 = scmp.ne.s32.totalorder %s2356_s1, %s1829_s22  ;;  %s31_s19 = int_to_ptr.vmem [resolvable:$true] %s30_s19 }
   0x4   :  { %p1833_p1 = scmp.lt.u32.totalorder %s1829_s22, %s2356_s1 }
   0x6   :  { %p1835_p2 = pnand %p1833_p1, %p1830_p0 }
   0x8   :  { %1838 = shalt.err (!%p1835_p2)
}
   0x9   :  { %s1839_s27 = scalar_lea.vmem %s31_s19, 256  ;;  %p1844_p4 = scmp.lt.s32.totalorder %s31_s19, %s31_s19 }
   0xa   :  { %p1840_p3 = scmp.ne.s32.totalorder %s31_s19, %s1839_s27  ;;  %p1845_p5 = scmp.lt.s32.totalorder %s1839_s27, %s1839_s27 }
   0xc   :  { %p1846_p6 = por %p1845_p5, %p1844_p4 }
   0xe   :  { %p1847_p7 = pnand %p1846_p6, %p1840_p3 }
  0x10   :  { %1850 = shalt.err (!%p1847_p7)
}
  0x11   :  { %s1924_s28 = smov 64   ;;  %s1925_s29 = smov 4  }
  0x12   :  { %36 = dma.hbm_to_vmem [thread:$0]  %s2356_s1, 256, %s31_s19, [#allocation8], %s1924_s28, %s1924_s28, %s1925_s29  }
  0x13   :  { %s1926_s7 = smov [#allocation4]   ;;  %s1851_s11 = scalar_lea.hbm %s2355_s0, 256 }
  0x14   :  { %s18_s8 = sshll.u32 %s1926_s7, 4  ;;  %p1852_p8 = scmp.ne.s32.totalorder %s2355_s0, %s1851_s11  ;;  %s19_s8 = int_to_ptr.vmem [resolvable:$true] %s18_s8 }
  0x15   :  { %p1855_p9 = scmp.lt.u32.totalorder %s1851_s11, %s2355_s0 }
  0x17   :  { %p1857_p10 = pnand %p1855_p9, %p1852_p8 }
  0x19   :  { %1860 = shalt.err (!%p1857_p10)
}
  0x1a   :  { %s1861_s16 = scalar_lea.vmem %s19_s8, 256  ;;  %p1866_p12 = scmp.lt.s32.totalorder %s19_s8, %s19_s8 }
  0x1b   :  { %p1862_p11 = scmp.ne.s32.totalorder %s19_s8, %s1861_s16  ;;  %p1867_p13 = scmp.lt.s32.totalorder %s1861_s16, %s1861_s16 }
  0x1d   :  { %p1868_p0 = por %p1867_p13, %p1866_p12 }
  0x1f   :  { %p1869_p1 = pnand %p1868_p0, %p1862_p11 }
  0x21   :  { %1872 = shalt.err (!%p1869_p1)
}
  0x22   :  { %s1927_s1 = smov 128   ;;  %s1928_s17 = smov 8  }
  0x23   :  { %24 = dma.hbm_to_vmem [thread:$0]  %s2355_s0, 256, %s19_s8, [#allocation5], %s1927_s1, %s1927_s1, %s1928_s17  }
  0x24   :  { %s1929_s20 = smov [#allocation9]   ;;  %s1873_s24 = scalar_lea.hbm %s2357_s2, 512 }
  0x25   :  { %s42_s21 = sshll.u32 %s1929_s20, 4  ;;  %p1874_p2 = scmp.ne.s32.totalorder %s2357_s2, %s1873_s24  ;;  %s43_s21 = int_to_ptr.vmem [resolvable:$true] %s42_s21 }
  0x26   :  { %p1877_p3 = scmp.lt.u32.totalorder %s1873_s24, %s2357_s2 }
  0x28   :  { %p1879_p4 = pnand %p1877_p3, %p1874_p2 }
  0x2a   :  { %1882 = shalt.err (!%p1879_p4)
}
  0x2b   :  { %s1883_s6 = scalar_lea.vmem %s43_s21, 512  ;;  %p1888_p6 = scmp.lt.s32.totalorder %s43_s21, %s43_s21 }
  0x2c   :  { %p1884_p5 = scmp.ne.s32.totalorder %s43_s21, %s1883_s6  ;;  %p1889_p7 = scmp.lt.s32.totalorder %s1883_s6, %s1883_s6 }
  0x2e   :  { %p1890_p8 = por %p1889_p7, %p1888_p6 }
  0x30   :  { %p1891_p9 = pnand %p1890_p8, %p1884_p5 }
  0x32   :  { %1894 = shalt.err (!%p1891_p9)
}
  0x33   :  { %48 = dma.hbm_to_vmem [thread:$0]  %s2357_s2, 512, %s43_s21, [#allocation8], %s1924_s28, %s1924_s28, %s1925_s29  }
  0x34   :  { %1917 = dma.done.wait [#allocation5], 256  }
  0x35   :  { %1918 = vsyncadd [#allocation5], 4294967040 }
  0x36   :  { %1919 = dma.done.wait [#allocation8], 768  }
  0x37   :  { %1920 = vsyncadd [#allocation8], 4294966528  ;;  %v1930_v0 = vmov 0.0   ;;  %vm1931_vm0 = vmmov 0   ;;  %v1727_v1 = vld [vmem:[#allocation7] sm:$0xff]   ;;  %v63_v2 = vld [vmem:[#allocation4] sm:$0xff] }
  0x38   :  { %1575 = vmatprep.subr.bf16.mxu0 %v1930_v0  ;;  %1577 = vmatprep.mubr.msk.bf16.mxu0 %vm1931_vm0, %v1930_v0  ;;  %v64_v3 = vld [vmem:[#allocation4 + $0x8] sm:$0xff]  ;;  %vm81_vm1 = vcmask 130048   ;;  %v1728_v5 = vld [vmem:[#allocation7 + $0x8] sm:$0xff]   ;;  %v2017_v6 = vld [vmem:[#allocation9] sm:$0xff]   ;;  %v1932_v10 = vmov 0   ;;  %vm126_vm2 = vcmask 785408  }
  0x39   :  { %1581 = vmatprep.subr.bf16.mxu1 %v1930_v0  ;;  %1583 = vmatprep.mubr.msk.bf16.mxu1 %vm1931_vm0, %v1930_v0  ;;  %v65_v4 = vpack.c.bf16 %v64_v3, %v63_v2  ;;  %v2020_v7 = vld [vmem:[#allocation9 + $0x10] sm:$0xff]   ;;  %v2023_v8 = vld [vmem:[#allocation9 + $0x8] sm:$0xff]   ;;  %v2029_v9 = vld [vmem:[#allocation9 + $0x18] sm:$0xff]   ;;  %vm381_vm3 = vcmask 517376   ;;  %vm227_vm4 = vcmask 261120   ;;  %vm379_vm5 = vcmask 254976  }
  0x3a   :  { %1576 = vmatpush3.bf16.msra.mxu0 %v1727_v1  ;;  %1582 = vmatpush3.bf16.msra.mxu1 %v1728_v5  ;;  %v1479_v11 = vld [vmem:[%s2358_s3] ss:$0 sm:$0xff]  ;;  %v1483_v16 = vld [vmem:[%s2358_s3 + $0x1] ss:$0 sm:$0xff] }
  0x3b   :  { %1587 = vmatprep.subr.bf16.mxu0 %v1930_v0  ;;  %1595 = vmatprep.subr.bf16.mxu1 %v1930_v0  ;;  %v2062_v25 = vld [vmem:[%s2359_s4] ss:$0 sm:$0xff]  ;;  %v2068_v27 = vld [vmem:[%s2359_s4 + $0x1] ss:$0 sm:$0xff]  ;;  %s1933_s4 = smov 96  }
  0x3d   :  { %1578 = vmatmul.mubr.msk.bf16.vlgmr.msra.gmra.mrb[0].mxu0 %vm81_vm1, %v65_v4  ;;  %1584 = vmatmul.mubr.msk.bf16.vlgmr.msra.gmra.mrb[0].mxu1 %vm81_vm1, %v65_v4 }
  0x3e   :  { %1588 = vmatpush3.bf16.msra.mxu0 %v2017_v6  ;;  %1591 = vmatprep.mubr.msk.bf16.mxu0 %vm1931_vm0, %v1930_v0 }
  0x3f   :  { %1589 = vmatprep.subr.bf16.mxu0 %v1930_v0  ;;  %1596 = vmatpush3.bf16.msra.mxu1 %v2020_v7 }
  0x40   :  { %1599 = vmatprep.mubr.msk.bf16.mxu1 %vm1931_vm0, %v1930_v0  ;;  %1597 = vmatprep.subr.bf16.mxu1 %v1930_v0 }
  0x42   :  { %1590 = vmatpush3.bf16.msra.mxu0 %v2023_v8 }
  0x43   :  { %1603 = vmatprep.subr.bf16.mxu0 %v1930_v0  ;;  %1598 = vmatpush3.bf16.msra.mxu1 %v2029_v9 }
  0x44   :  { %1611 = vmatprep.subr.bf16.mxu1 %v1930_v0 }
  0x45   :  { %1592 = vmatmul.mubr.bf16.vlgmr.msra.gmra.mrb[4].mxu0 %v1932_v10 }
  0x46   :  { %1604 = vmatpush3.bf16.msra.mxu0 %v2017_v6  ;;  %1607 = vmatprep.mubr.msk.bf16.mxu0 %vm1931_vm0, %v1930_v0 }
  0x47   :  { %1600 = vmatmul.mubr.bf16.vlgmr.msra.gmra.mrb[4].mxu1 %v1932_v10  ;;  %1605 = vmatprep.subr.bf16.mxu0 %v1930_v0 }
  0x48   :  { %1612 = vmatpush3.bf16.msra.mxu1 %v2020_v7  ;;  %1615 = vmatprep.mubr.msk.bf16.mxu1 %vm1931_vm0, %v1930_v0 }
  0x49   :  { %1613 = vmatprep.subr.bf16.mxu1 %v1930_v0 }
  0x4a   :  { %1606 = vmatpush3.bf16.msra.mxu0 %v2023_v8 }
  0x4b   :  { %1619 = vmatprep.subr.bf16.mxu0 %v1930_v0 }
  0x4c   :  { %1614 = vmatpush3.bf16.msra.mxu1 %v2029_v9 }
  0x4d   :  { %1627 = vmatprep.subr.bf16.mxu1 %v1930_v0 }
 0x110   :  { %v119_v12 = vpop.f32.mrb[0].mxu0  ;;  %v180_v17 = vpop.f32.mrb[0].mxu1 }
 0x111   :  { %v120_v13 = vadd.f32 %v1479_v11, %v119_v12  ;;  %v1579_v14 = vpop.f32.mrb[1].mxu0  ;;  %v181_v20 = vadd.f32 %v1483_v16, %v180_v17  ;;  %v1585_v21 = vpop.f32.mrb[1].mxu1 }
 0x112   :  { %v122_v15 = vpop.f32.mrb[2].mxu0  ;;  %v183_v22 = vpop.f32.mrb[2].mxu1 }
 0x113   :  { %127 = vst.msk [vmem:[#allocation2] sm:$0xff] %vm126_vm2, %v120_v13  ;;  %v123_v18 = vadd.f32 %v1479_v11, %v122_v15  ;;  %v1580_v19 = vpop.f32.mrb[3].mxu0  ;;  %187 = vst.msk [vmem:[#allocation3] sm:$0xff] %vm126_vm2, %v181_v20  ;;  %v184_v23 = vadd.f32 %v1483_v16, %v183_v22  ;;  %v1586_v24 = vpop.f32.mrb[3].mxu1 }
 0x115   :  { %128 = vst.msk [vmem:[#allocation2 + $0x8] sm:$0xff] %vm126_vm2, %v123_v18  ;;  %188 = vst.msk [vmem:[#allocation3 + $0x8] sm:$0xff] %vm126_vm2, %v184_v23 }
 0x118   :  { %v265_v26 = vpop.f32.mrb[4].mxu0 }
 0x119   :  { %v266_v28 = vadd.f32 %v2062_v25, %v265_v26  ;;  %v1593_v29 = vpop.f32.mrb[5].mxu0 }
 0x11a   :  { %v268_v30 = vpop.f32.mrb[6].mxu0  ;;  %v343_v31 = vpop.f32.mrb[4].mxu1  ;;  %v213_v37 = vld [vmem:[#allocation2] sm:$0x3]  ;;  %v383_v24 = vld [vmem:[#allocation2 + $0x2] sm:$0x3] }
 0x11b   :  { %279 = vrot.lane.b32.xlu0 %v266_v28, %s1924_s28  ;;  %v1594_v32 = vpop.f32.mrb[7].mxu0  ;;  %v344_v33 = vadd.f32 %v2068_v27, %v343_v31  ;;  %v1601_v34 = vpop.f32.mrb[5].mxu1  ;;  %v271_v39 = vadd.f32 %v266_v28, %v213_v37 }
 0x11c   :  { %v346_v35 = vpop.f32.mrb[6].mxu1  ;;  %v214_v38 = vld [vmem:[#allocation3 + $0xe] sm:$0x3]  ;;  %v384_v28 = vld [vmem:[#allocation3 + $0xc] sm:$0x3] }
 0x11d   :  { %v1602_v36 = vpop.f32.mrb[7].mxu1  ;;  %v349_v40 = vadd.f32 %v344_v33, %v214_v38  ;;  %v1491_v41 = vmul.f32 -1.442695, %v271_v39 }
 0x11f   :  { %357 = vrot.lane.b32.xlu0 %v344_v33, %s1924_s28  ;;  %v1494_v42 = vmul.f32 -1.442695, %v349_v40  ;;  %1733 = vpow2.f32 %v1491_v41 }
 0x121   :  { %1735 = vpow2.f32 %v1494_v42 }
 0x129   :  { %v1734_v43 = vpop.eup %1733 }
 0x12a   :  { %v275_v45 = vadd.f32 1.0, %v1734_v43 }
 0x12b   :  { %v1736_v44 = vpop.eup %1735 }
 0x12c   :  { %v353_v46 = vadd.f32 1.0, %v1736_v44  ;;  %1737 = vrcp.f32 %v275_v45 }
 0x12e   :  { %1739 = vrcp.f32 %v353_v46 }
 0x136   :  { %v1738_v47 = vpop.eup %1737 }
 0x137   :  { %v289_v59 = vsub.f32 1.0, %v1738_v47  ;;  %v295_v61 = vmul.f32 0.0, %v1738_v47 }
 0x138   :  { %v1740_v50 = vpop.eup %1739 }
 0x139   :  { %v367_v1 = vsub.f32 1.0, %v1740_v50  ;;  %v373_v3 = vmul.f32 0.0, %v1740_v50 }
 0x18d   :  { %v280_v48 = vpop.permute.xlu0 %279 }
 0x18e   :  { %v282_v49 = vmul.f32 %v1738_v47, %v280_v48 }
 0x190   :  { %284 = vrot.lane.b32.xlu1 %v282_v49, %s1924_s28 }
 0x191   :  { %v358_v51 = vpop.permute.xlu0 %357 }
 0x192   :  { %v360_v52 = vmul.f32 %v1740_v50, %v358_v51 }
 0x194   :  { %362 = vrot.lane.b32.xlu1 %v360_v52, %s1924_s28 }
 0x202   :  { %v285_v53 = vpop.permute.xlu1 %284 }
 0x203   :  { %v287_v54 = vadd.f32 %v285_v53, %v213_v37 }
 0x205   :  { %1741 = vtanh.f32 %v287_v54 }
 0x206   :  { %v363_v55 = vpop.permute.xlu1 %362 }
 0x207   :  { %v365_v56 = vadd.f32 %v363_v55, %v214_v38 }
 0x209   :  { %1743 = vtanh.f32 %v365_v56 }
 0x20f   :  { %v1742_v57 = vpop.eup %1741 }
 0x210   :  { %291 = vrot.lane.b32.xlu0 %v1742_v57, %s1933_s4 }
 0x213   :  { %v1744_v58 = vpop.eup %1743 }
 0x214   :  { %369 = vrot.lane.b32.xlu1 %v1744_v58, %s1933_s4 }
 0x282   :  { %v292_v60 = vpop.permute.xlu0 %291 }
 0x283   :  { %v294_v62 = vmul.f32 %v292_v60, %v289_v59 }
 0x285   :  { %v2078_v63 = vadd.f32 %v295_v61, %v294_v62 }
 0x286   :  { %v370_v2 = vpop.permute.xlu1 %369 }
 0x287   :  { %v372_v4 = vmul.f32 %v370_v2, %v367_v1  ;;  %v385_v5 = vpack.c.bf16 %v2078_v63, %v2078_v63 }
 0x289   :  { %v2082_v10 = vadd.f32 %v373_v3, %v372_v4  ;;  %387 = vrot.lane.b32.xlu0 %v385_v5, %s1933_s4 }
 0x28b   :  { %382 = vst.msk [vmem:[#allocation10 + $0xe] sm:$0x3] %vm381_vm3, %v2082_v10  ;;  %v458_v11 = vpack.c.bf16 %v2082_v10, %v2082_v10 }
 0x28d   :  { %460 = vrot.lane.b32.xlu1 %v458_v11, %s1933_s4 }
 0x2fb   :  { %v388_v12 = vpop.permute.xlu0 %387 }
 0x2fc   :  { %1608 = vmatmul.mubr.msk.bf16.vlgmr.msra.gmra.mrb[8].mxu0 %vm227_vm4, %v388_v12 }
 0x2fd   :  { %1620 = vmatpush3.bf16.msra.mxu0 %v2017_v6  ;;  %1623 = vmatprep.mubr.msk.bf16.mxu0 %vm1931_vm0, %v1930_v0 }
 0x2fe   :  { %1621 = vmatprep.subr.bf16.mxu0 %v1930_v0 }
 0x2ff   :  { %v461_v13 = vpop.permute.xlu1 %460 }
 0x300   :  { %1616 = vmatmul.mubr.msk.bf16.vlgmr.msra.gmra.mrb[8].mxu1 %vm227_vm4, %v461_v13 }
 0x301   :  { %1622 = vmatpush3.bf16.msra.mxu0 %v2023_v8  ;;  %1628 = vmatpush3.bf16.msra.mxu1 %v2020_v7 }
 0x302   :  { %1629 = vmatprep.subr.bf16.mxu1 %v1930_v0  ;;  %1631 = vmatprep.mubr.msk.bf16.mxu1 %vm1931_vm0, %v1930_v0 }
 0x303   :  { %1635 = vmatprep.subr.bf16.mxu0 %v1930_v0 }
 0x305   :  { %1630 = vmatpush3.bf16.msra.mxu1 %v2029_v9 }
 0x306   :  { %1643 = vmatprep.subr.bf16.mxu1 %v1930_v0 }
 0x3cf   :  { %v426_v14 = vpop.f32.mrb[8].mxu0 }
 0x3d0   :  { %v427_v15 = vadd.f32 %v2062_v25, %v426_v14  ;;  %v1609_v16 = vpop.f32.mrb[9].mxu0  ;;  %v537_v14 = vld [vmem:[#allocation2 + $0x4] sm:$0x3] }
 0x3d1   :  { %v429_v17 = vpop.f32.mrb[10].mxu0  ;;  %v538_v16 = vld [vmem:[#allocation3 + $0xa] sm:$0x3] }
 0x3d2   :  { %440 = vrot.lane.b32.xlu0 %v427_v15, %s1924_s28  ;;  %v1610_v18 = vpop.f32.mrb[11].mxu0  ;;  %v432_v26 = vadd.f32 %v427_v15, %v383_v24 }
 0x3d3   :  { %v499_v19 = vpop.f32.mrb[8].mxu1 }
 0x3d4   :  { %v500_v20 = vadd.f32 %v2068_v27, %v499_v19  ;;  %v1617_v21 = vpop.f32.mrb[9].mxu1  ;;  %v1496_v29 = vmul.f32 -1.442695, %v432_v26 }
 0x3d5   :  { %v502_v22 = vpop.f32.mrb[10].mxu1 }
 0x3d6   :  { %513 = vrot.lane.b32.xlu1 %v500_v20, %s1924_s28  ;;  %v1618_v23 = vpop.f32.mrb[11].mxu1  ;;  %v505_v30 = vadd.f32 %v500_v20, %v384_v28  ;;  %1745 = vpow2.f32 %v1496_v29 }
 0x3d8   :  { %v1498_v31 = vmul.f32 -1.442695, %v505_v30 }
 0x3da   :  { %1747 = vpow2.f32 %v1498_v31 }
 0x3e0   :  { %v1746_v32 = vpop.eup %1745 }
 0x3e1   :  { %v436_v33 = vadd.f32 1.0, %v1746_v32 }
 0x3e3   :  { %1749 = vrcp.f32 %v436_v33 }
 0x3e4   :  { %v1748_v34 = vpop.eup %1747 }
 0x3e5   :  { %v509_v35 = vadd.f32 1.0, %v1748_v34 }
 0x3e7   :  { %1751 = vrcp.f32 %v509_v35 }
 0x3ed   :  { %v1750_v36 = vpop.eup %1749 }
 0x3ee   :  { %v450_v48 = vsub.f32 1.0, %v1750_v36  ;;  %v456_v50 = vmul.f32 %v1750_v36, %v2078_v63 }
 0x3f1   :  { %v1752_v39 = vpop.eup %1751 }
 0x3f2   :  { %v523_v53 = vsub.f32 1.0, %v1752_v39  ;;  %v529_v55 = vmul.f32 %v1752_v39, %v2082_v10 }
 0x444   :  { %v441_v37 = vpop.permute.xlu0 %440 }
 0x445   :  { %v443_v38 = vmul.f32 %v1750_v36, %v441_v37 }
 0x447   :  { %445 = vrot.lane.b32.xlu0 %v443_v38, %s1924_s28 }
 0x448   :  { %v514_v40 = vpop.permute.xlu1 %513 }
 0x449   :  { %v516_v41 = vmul.f32 %v1752_v39, %v514_v40 }
 0x44b   :  { %518 = vrot.lane.b32.xlu1 %v516_v41, %s1924_s28 }
 0x4b9   :  { %v446_v42 = vpop.permute.xlu0 %445 }
 0x4ba   :  { %v448_v43 = vadd.f32 %v446_v42, %v383_v24 }
 0x4bc   :  { %1753 = vtanh.f32 %v448_v43 }
 0x4bd   :  { %v519_v44 = vpop.permute.xlu1 %518 }
 0x4be   :  { %v521_v45 = vadd.f32 %v519_v44, %v384_v28 }
 0x4c0   :  { %1755 = vtanh.f32 %v521_v45 }
 0x4c6   :  { %v1754_v46 = vpop.eup %1753 }
 0x4c7   :  { %452 = vrot.lane.b32.xlu0 %v1754_v46, %s1933_s4 }
 0x4ca   :  { %v1756_v47 = vpop.eup %1755 }
 0x4cb   :  { %525 = vrot.lane.b32.xlu1 %v1756_v47, %s1933_s4 }
 0x539   :  { %v453_v49 = vpop.permute.xlu0 %452 }
 0x53a   :  { %v455_v51 = vmul.f32 %v453_v49, %v450_v48 }
 0x53c   :  { %v2113_v52 = vadd.f32 %v456_v50, %v455_v51 }
 0x53d   :  { %v526_v54 = vpop.permute.xlu1 %525 }
 0x53e   :  { %v528_v56 = vmul.f32 %v526_v54, %v523_v53  ;;  %v539_v57 = vpack.c.bf16 %v2113_v52, %v2113_v52 }
 0x540   :  { %v2118_v58 = vadd.f32 %v529_v55, %v528_v56  ;;  %541 = vrot.lane.b32.xlu0 %v539_v57, %s1933_s4 }
 0x542   :  { %536 = vst.msk [vmem:[#allocation10 + $0xc] sm:$0x3] %vm381_vm3, %v2118_v58  ;;  %v612_v59 = vpack.c.bf16 %v2118_v58, %v2118_v58 }
 0x544   :  { %614 = vrot.lane.b32.xlu1 %v612_v59, %s1933_s4 }
 0x5b2   :  { %v542_v60 = vpop.permute.xlu0 %541 }
 0x5b3   :  { %1624 = vmatmul.mubr.msk.bf16.vlgmr.msra.gmra.mrb[12].mxu0 %vm227_vm4, %v542_v60 }
 0x5b4   :  { %1636 = vmatpush3.bf16.msra.mxu0 %v2017_v6  ;;  %1639 = vmatprep.mubr.msk.bf16.mxu0 %vm1931_vm0, %v1930_v0 }
 0x5b5   :  { %1637 = vmatprep.subr.bf16.mxu0 %v1930_v0 }
 0x5b6   :  { %v615_v61 = vpop.permute.xlu1 %614 }
 0x5b7   :  { %1632 = vmatmul.mubr.msk.bf16.vlgmr.msra.gmra.mrb[12].mxu1 %vm227_vm4, %v615_v61 }
 0x5b8   :  { %1638 = vmatpush3.bf16.msra.mxu0 %v2023_v8  ;;  %1644 = vmatpush3.bf16.msra.mxu1 %v2020_v7 }
 0x5b9   :  { %1645 = vmatprep.subr.bf16.mxu1 %v1930_v0  ;;  %1647 = vmatprep.mubr.msk.bf16.mxu1 %vm1931_vm0, %v1930_v0 }
 0x5ba   :  { %1651 = vmatprep.subr.bf16.mxu0 %v1930_v0 }
 0x5bc   :  { %1646 = vmatpush3.bf16.msra.mxu1 %v2029_v9 }
 0x5bd   :  { %1659 = vmatprep.subr.bf16.mxu1 %v1930_v0 }
 0x686   :  { %v580_v62 = vpop.f32.mrb[12].mxu0 }
 0x687   :  { %v581_v1 = vadd.f32 %v2062_v25, %v580_v62  ;;  %v1625_v2 = vpop.f32.mrb[13].mxu0 }
 0x688   :  { %v583_v3 = vpop.f32.mrb[14].mxu0 }
 0x689   :  { %594 = vrot.lane.b32.xlu0 %v581_v1, %s1924_s28  ;;  %v1626_v4 = vpop.f32.mrb[15].mxu0  ;;  %v586_v15 = vadd.f32 %v581_v1, %v537_v14  ;;  %v691_v1 = vld [vmem:[#allocation2 + $0x6] sm:$0x3]  ;;  %v692_v3 = vld [vmem:[#allocation3 + $0x8] sm:$0x3] }
 0x68a   :  { %v653_v5 = vpop.f32.mrb[12].mxu1 }
 0x68b   :  { %v654_v10 = vadd.f32 %v2068_v27, %v653_v5  ;;  %v1633_v11 = vpop.f32.mrb[13].mxu1  ;;  %v1500_v17 = vmul.f32 -1.442695, %v586_v15 }
 0x68c   :  { %v656_v12 = vpop.f32.mrb[14].mxu1 }
 0x68d   :  { %667 = vrot.lane.b32.xlu1 %v654_v10, %s1924_s28  ;;  %v1634_v13 = vpop.f32.mrb[15].mxu1  ;;  %v659_v18 = vadd.f32 %v654_v10, %v538_v16  ;;  %1757 = vpow2.f32 %v1500_v17 }
 0x68f   :  { %v1502_v19 = vmul.f32 -1.442695, %v659_v18 }
 0x691   :  { %1759 = vpow2.f32 %v1502_v19 }
 0x697   :  { %v1758_v20 = vpop.eup %1757 }
 0x698   :  { %v590_v21 = vadd.f32 1.0, %v1758_v20 }
 0x69a   :  { %1761 = vrcp.f32 %v590_v21 }
 0x69b   :  { %v1760_v22 = vpop.eup %1759 }
 0x69c   :  { %v663_v23 = vadd.f32 1.0, %v1760_v22 }
 0x69e   :  { %1763 = vrcp.f32 %v663_v23 }
 0x6a4   :  { %v1762_v24 = vpop.eup %1761 }
 0x6a5   :  { %v604_v38 = vsub.f32 1.0, %v1762_v24  ;;  %v610_v40 = vmul.f32 %v1762_v24, %v2113_v52 }
 0x6a8   :  { %v1764_v29 = vpop.eup %1763 }
 0x6a9   :  { %v677_v43 = vsub.f32 1.0, %v1764_v29  ;;  %v683_v45 = vmul.f32 %v1764_v29, %v2118_v58 }
 0x6fb   :  { %v595_v26 = vpop.permute.xlu0 %594 }
 0x6fc   :  { %v597_v28 = vmul.f32 %v1762_v24, %v595_v26 }
 0x6fe   :  { %599 = vrot.lane.b32.xlu0 %v597_v28, %s1924_s28 }
 0x6ff   :  { %v668_v30 = vpop.permute.xlu1 %667 }
 0x700   :  { %v670_v31 = vmul.f32 %v1764_v29, %v668_v30 }
 0x702   :  { %672 = vrot.lane.b32.xlu1 %v670_v31, %s1924_s28 }
 0x770   :  { %v600_v32 = vpop.permute.xlu0 %599 }
 0x771   :  { %v602_v33 = vadd.f32 %v600_v32, %v537_v14 }
 0x773   :  { %1765 = vtanh.f32 %v602_v33 }
 0x774   :  { %v673_v34 = vpop.permute.xlu1 %672 }
 0x775   :  { %v675_v35 = vadd.f32 %v673_v34, %v538_v16 }
 0x777   :  { %1767 = vtanh.f32 %v675_v35 }
 0x77d   :  { %v1766_v36 = vpop.eup %1765 }
 0x77e   :  { %606 = vrot.lane.b32.xlu0 %v1766_v36, %s1933_s4 }
 0x781   :  { %v1768_v37 = vpop.eup %1767 }
 0x782   :  { %679 = vrot.lane.b32.xlu1 %v1768_v37, %s1933_s4 }
 0x7f0   :  { %v607_v39 = vpop.permute.xlu0 %606 }
 0x7f1   :  { %v609_v41 = vmul.f32 %v607_v39, %v604_v38 }
 0x7f3   :  { %v2149_v42 = vadd.f32 %v610_v40, %v609_v41 }
 0x7f4   :  { %v680_v44 = vpop.permute.xlu1 %679 }
 0x7f5   :  { %v682_v46 = vmul.f32 %v680_v44, %v677_v43  ;;  %v693_v47 = vpack.c.bf16 %v2149_v42, %v2149_v42 }
 0x7f7   :  { %v2154_v48 = vadd.f32 %v683_v45, %v682_v46  ;;  %695 = vrot.lane.b32.xlu0 %v693_v47, %s1933_s4 }
 0x7f9   :  { %690 = vst.msk [vmem:[#allocation10 + $0xa] sm:$0x3] %vm381_vm3, %v2154_v48  ;;  %v766_v49 = vpack.c.bf16 %v2154_v48, %v2154_v48 }
 0x7fb   :  { %768 = vrot.lane.b32.xlu1 %v766_v49, %s1933_s4 }
 0x869   :  { %v696_v50 = vpop.permute.xlu0 %695 }
 0x86a   :  { %1640 = vmatmul.mubr.msk.bf16.vlgmr.msra.gmra.mrb[16].mxu0 %vm227_vm4, %v696_v50 }
 0x86b   :  { %1652 = vmatpush3.bf16.msra.mxu0 %v2017_v6  ;;  %1655 = vmatprep.mubr.msk.bf16.mxu0 %vm1931_vm0, %v1930_v0 }
 0x86c   :  { %1653 = vmatprep.subr.bf16.mxu0 %v1930_v0 }
 0x86d   :  { %v769_v51 = vpop.permute.xlu1 %768 }
 0x86e   :  { %1648 = vmatmul.mubr.msk.bf16.vlgmr.msra.gmra.mrb[16].mxu1 %vm227_vm4, %v769_v51 }
 0x86f   :  { %1654 = vmatpush3.bf16.msra.mxu0 %v2023_v8  ;;  %1660 = vmatpush3.bf16.msra.mxu1 %v2020_v7 }
 0x870   :  { %1661 = vmatprep.subr.bf16.mxu1 %v1930_v0  ;;  %1663 = vmatprep.mubr.msk.bf16.mxu1 %vm1931_vm0, %v1930_v0 }
 0x871   :  { %1667 = vmatprep.subr.bf16.mxu0 %v1930_v0 }
 0x873   :  { %1662 = vmatpush3.bf16.msra.mxu1 %v2029_v9 }
 0x874   :  { %1675 = vmatprep.subr.bf16.mxu1 %v1930_v0 }
 0x93d   :  { %v734_v53 = vpop.f32.mrb[16].mxu0 }
 0x93e   :  { %v735_v54 = vadd.f32 %v2062_v25, %v734_v53  ;;  %v1641_v55 = vpop.f32.mrb[17].mxu0 }
 0x93f   :  { %v737_v56 = vpop.f32.mrb[18].mxu0  ;;  %v845_v55 = vld [vmem:[#allocation2 + $0x8] sm:$0x3] }
 0x940   :  { %748 = vrot.lane.b32.xlu0 %v735_v54, %s1924_s28  ;;  %v1642_v57 = vpop.f32.mrb[19].mxu0  ;;  %v740_v2 = vadd.f32 %v735_v54, %v691_v1 }
 0x941   :  { %v807_v58 = vpop.f32.mrb[16].mxu1  ;;  %v846_v57 = vld [vmem:[#allocation3 + $0x6] sm:$0x3] }
 0x942   :  { %v808_v59 = vadd.f32 %v2068_v27, %v807_v58  ;;  %v1649_v60 = vpop.f32.mrb[17].mxu1  ;;  %v1504_v4 = vmul.f32 -1.442695, %v740_v2 }
 0x943   :  { %v810_v61 = vpop.f32.mrb[18].mxu1 }
 0x944   :  { %821 = vrot.lane.b32.xlu1 %v808_v59, %s1924_s28  ;;  %v1650_v62 = vpop.f32.mrb[19].mxu1  ;;  %v813_v5 = vadd.f32 %v808_v59, %v692_v3  ;;  %1769 = vpow2.f32 %v1504_v4 }
 0x946   :  { %v1506_v10 = vmul.f32 -1.442695, %v813_v5 }
 0x948   :  { %1771 = vpow2.f32 %v1506_v10 }
 0x94e   :  { %v1770_v11 = vpop.eup %1769 }
 0x94f   :  { %v744_v12 = vadd.f32 1.0, %v1770_v11 }
 0x951   :  { %1773 = vrcp.f32 %v744_v12 }
 0x952   :  { %v1772_v13 = vpop.eup %1771 }
 0x953   :  { %v817_v14 = vadd.f32 1.0, %v1772_v13 }
 0x955   :  { %1775 = vrcp.f32 %v817_v14 }
 0x95b   :  { %v1774_v15 = vpop.eup %1773 }
 0x95c   :  { %v758_v29 = vsub.f32 1.0, %v1774_v15  ;;  %v764_v31 = vmul.f32 %v1774_v15, %v2149_v42 }
 0x95f   :  { %v1776_v18 = vpop.eup %1775 }
 0x960   :  { %v831_v34 = vsub.f32 1.0, %v1776_v18  ;;  %v837_v36 = vmul.f32 %v1776_v18, %v2154_v48 }
 0x9b2   :  { %v749_v16 = vpop.permute.xlu0 %748 }
 0x9b3   :  { %v751_v17 = vmul.f32 %v1774_v15, %v749_v16 }
 0x9b5   :  { %753 = vrot.lane.b32.xlu0 %v751_v17, %s1924_s28 }
 0x9b6   :  { %v822_v19 = vpop.permute.xlu1 %821 }
 0x9b7   :  { %v824_v20 = vmul.f32 %v1776_v18, %v822_v19 }
 0x9b9   :  { %826 = vrot.lane.b32.xlu1 %v824_v20, %s1924_s28 }
 0xa27   :  { %v754_v21 = vpop.permute.xlu0 %753 }
 0xa28   :  { %v756_v22 = vadd.f32 %v754_v21, %v691_v1 }
 0xa2a   :  { %1777 = vtanh.f32 %v756_v22 }
 0xa2b   :  { %v827_v23 = vpop.permute.xlu1 %826 }
 0xa2c   :  { %v829_v24 = vadd.f32 %v827_v23, %v692_v3 }
 0xa2e   :  { %1779 = vtanh.f32 %v829_v24 }
 0xa34   :  { %v1778_v26 = vpop.eup %1777 }
 0xa35   :  { %760 = vrot.lane.b32.xlu0 %v1778_v26, %s1933_s4 }
 0xa38   :  { %v1780_v28 = vpop.eup %1779 }
 0xa39   :  { %833 = vrot.lane.b32.xlu1 %v1780_v28, %s1933_s4 }
 0xaa7   :  { %v761_v30 = vpop.permute.xlu0 %760 }
 0xaa8   :  { %v763_v32 = vmul.f32 %v761_v30, %v758_v29 }
 0xaaa   :  { %v2185_v33 = vadd.f32 %v764_v31, %v763_v32 }
 0xaab   :  { %v834_v35 = vpop.permute.xlu1 %833 }
 0xaac   :  { %v836_v37 = vmul.f32 %v834_v35, %v831_v34  ;;  %v847_v38 = vpack.c.bf16 %v2185_v33, %v2185_v33 }
 0xaae   :  { %v2190_v39 = vadd.f32 %v837_v36, %v836_v37  ;;  %849 = vrot.lane.b32.xlu0 %v847_v38, %s1933_s4 }
 0xab0   :  { %844 = vst.msk [vmem:[#allocation10 + $0x8] sm:$0x3] %vm381_vm3, %v2190_v39  ;;  %v920_v40 = vpack.c.bf16 %v2190_v39, %v2190_v39 }
 0xab2   :  { %922 = vrot.lane.b32.xlu1 %v920_v40, %s1933_s4 }
 0xb20   :  { %v850_v41 = vpop.permute.xlu0 %849 }
 0xb21   :  { %1656 = vmatmul.mubr.msk.bf16.vlgmr.msra.gmra.mrb[20].mxu0 %vm227_vm4, %v850_v41 }
 0xb22   :  { %1668 = vmatpush3.bf16.msra.mxu0 %v2017_v6  ;;  %1671 = vmatprep.mubr.msk.bf16.mxu0 %vm1931_vm0, %v1930_v0 }
 0xb23   :  { %1669 = vmatprep.subr.bf16.mxu0 %v1930_v0 }
 0xb24   :  { %v923_v43 = vpop.permute.xlu1 %922 }
 0xb25   :  { %1664 = vmatmul.mubr.msk.bf16.vlgmr.msra.gmra.mrb[20].mxu1 %vm227_vm4, %v923_v43 }
 0xb26   :  { %1670 = vmatpush3.bf16.msra.mxu0 %v2023_v8  ;;  %1676 = vmatpush3.bf16.msra.mxu1 %v2020_v7 }
 0xb27   :  { %1677 = vmatprep.subr.bf16.mxu1 %v1930_v0  ;;  %1679 = vmatprep.mubr.msk.bf16.mxu1 %vm1931_vm0, %v1930_v0 }
 0xb28   :  { %1683 = vmatprep.subr.bf16.mxu0 %v1930_v0 }
 0xb2a   :  { %1678 = vmatpush3.bf16.msra.mxu1 %v2029_v9 }
 0xb2b   :  { %1691 = vmatprep.subr.bf16.mxu1 %v1930_v0 }
 0xbf4   :  { %v888_v44 = vpop.f32.mrb[20].mxu0 }
 0xbf5   :  { %v889_v45 = vadd.f32 %v2062_v25, %v888_v44  ;;  %v1657_v46 = vpop.f32.mrb[21].mxu0 }
 0xbf6   :  { %v891_v47 = vpop.f32.mrb[22].mxu0 }
 0xbf7   :  { %902 = vrot.lane.b32.xlu0 %v889_v45, %s1924_s28  ;;  %v1658_v48 = vpop.f32.mrb[23].mxu0  ;;  %v894_v56 = vadd.f32 %v889_v45, %v845_v55  ;;  %v999_v47 = vld [vmem:[#allocation2 + $0xa] sm:$0x3] }
 0xbf8   :  { %v961_v49 = vpop.f32.mrb[20].mxu1 }
 0xbf9   :  { %v962_v50 = vadd.f32 %v2068_v27, %v961_v49  ;;  %v1665_v51 = vpop.f32.mrb[21].mxu1  ;;  %v1508_v58 = vmul.f32 -1.442695, %v894_v56  ;;  %v1000_v49 = vld [vmem:[#allocation3 + $0x4] sm:$0x3] }
 0xbfa   :  { %v964_v53 = vpop.f32.mrb[22].mxu1 }
 0xbfb   :  { %975 = vrot.lane.b32.xlu1 %v962_v50, %s1924_s28  ;;  %v1666_v54 = vpop.f32.mrb[23].mxu1  ;;  %v967_v59 = vadd.f32 %v962_v50, %v846_v57  ;;  %1781 = vpow2.f32 %v1508_v58 }
 0xbfd   :  { %v1510_v60 = vmul.f32 -1.442695, %v967_v59 }
 0xbff   :  { %1783 = vpow2.f32 %v1510_v60 }
 0xc05   :  { %v1782_v61 = vpop.eup %1781 }
 0xc06   :  { %v898_v62 = vadd.f32 1.0, %v1782_v61 }
 0xc08   :  { %1785 = vrcp.f32 %v898_v62 }
 0xc09   :  { %v1784_v1 = vpop.eup %1783 }
 0xc0a   :  { %v971_v2 = vadd.f32 1.0, %v1784_v1 }
 0xc0c   :  { %1787 = vrcp.f32 %v971_v2 }
 0xc12   :  { %v1786_v3 = vpop.eup %1785 }
 0xc13   :  { %v912_v19 = vsub.f32 1.0, %v1786_v3  ;;  %v918_v21 = vmul.f32 %v1786_v3, %v2185_v33 }
 0xc16   :  { %v1788_v10 = vpop.eup %1787 }
 0xc17   :  { %v985_v24 = vsub.f32 1.0, %v1788_v10  ;;  %v991_v28 = vmul.f32 %v1788_v10, %v2190_v39 }
 0xc69   :  { %v903_v4 = vpop.permute.xlu0 %902 }
 0xc6a   :  { %v905_v5 = vmul.f32 %v1786_v3, %v903_v4 }
 0xc6c   :  { %907 = vrot.lane.b32.xlu0 %v905_v5, %s1924_s28 }
 0xc6d   :  { %v976_v11 = vpop.permute.xlu1 %975 }
 0xc6e   :  { %v978_v12 = vmul.f32 %v1788_v10, %v976_v11 }
 0xc70   :  { %980 = vrot.lane.b32.xlu1 %v978_v12, %s1924_s28 }
 0xcde   :  { %v908_v13 = vpop.permute.xlu0 %907 }
 0xcdf   :  { %v910_v14 = vadd.f32 %v908_v13, %v845_v55 }
 0xce1   :  { %1789 = vtanh.f32 %v910_v14 }
 0xce2   :  { %v981_v15 = vpop.permute.xlu1 %980 }
 0xce3   :  { %v983_v16 = vadd.f32 %v981_v15, %v846_v57 }
 0xce5   :  { %1791 = vtanh.f32 %v983_v16 }
 0xceb   :  { %v1790_v17 = vpop.eup %1789 }
 0xcec   :  { %914 = vrot.lane.b32.xlu0 %v1790_v17, %s1933_s4 }
 0xcef   :  { %v1792_v18 = vpop.eup %1791 }
 0xcf0   :  { %987 = vrot.lane.b32.xlu1 %v1792_v18, %s1933_s4 }
 0xd5e   :  { %v915_v20 = vpop.permute.xlu0 %914 }
 0xd5f   :  { %v917_v22 = vmul.f32 %v915_v20, %v912_v19 }
 0xd61   :  { %v2221_v23 = vadd.f32 %v918_v21, %v917_v22 }
 0xd62   :  { %v988_v26 = vpop.permute.xlu1 %987 }
 0xd63   :  { %v990_v29 = vmul.f32 %v988_v26, %v985_v24  ;;  %v1001_v30 = vpack.c.bf16 %v2221_v23, %v2221_v23 }
 0xd65   :  { %v2226_v31 = vadd.f32 %v991_v28, %v990_v29  ;;  %1003 = vrot.lane.b32.xlu0 %v1001_v30, %s1933_s4 }
 0xd67   :  { %v1074_v32 = vpack.c.bf16 %v2226_v31, %v2226_v31 }
 0xd69   :  { %1076 = vrot.lane.b32.xlu1 %v1074_v32, %s1933_s4 }
 0xdd7   :  { %v1004_v34 = vpop.permute.xlu0 %1003 }
 0xdd8   :  { %1672 = vmatmul.mubr.msk.bf16.vlgmr.msra.gmra.mrb[24].mxu0 %vm227_vm4, %v1004_v34 }
 0xdd9   :  { %1684 = vmatpush3.bf16.msra.mxu0 %v2017_v6  ;;  %1687 = vmatprep.mubr.msk.bf16.mxu0 %vm1931_vm0, %v1930_v0 }
 0xdda   :  { %1685 = vmatprep.subr.bf16.mxu0 %v1930_v0 }
 0xddb   :  { %v1077_v35 = vpop.permute.xlu1 %1076 }
 0xddc   :  { %1680 = vmatmul.mubr.msk.bf16.vlgmr.msra.gmra.mrb[24].mxu1 %vm227_vm4, %v1077_v35 }
 0xddd   :  { %1686 = vmatpush3.bf16.msra.mxu0 %v2023_v8  ;;  %1692 = vmatpush3.bf16.msra.mxu1 %v2020_v7 }
 0xdde   :  { %1693 = vmatprep.subr.bf16.mxu1 %v1930_v0  ;;  %1695 = vmatprep.mubr.msk.bf16.mxu1 %vm1931_vm0, %v1930_v0 }
 0xddf   :  { %1699 = vmatprep.subr.bf16.mxu0 %v1930_v0 }
 0xde1   :  { %1694 = vmatpush3.bf16.msra.mxu1 %v2029_v9 }
 0xde2   :  { %1707 = vmatprep.subr.bf16.mxu1 %v1930_v0 }
 0xeab   :  { %v1042_v36 = vpop.f32.mrb[24].mxu0 }
 0xeac   :  { %v1043_v37 = vadd.f32 %v2062_v25, %v1042_v36  ;;  %v1673_v38 = vpop.f32.mrb[25].mxu0 }
 0xead   :  { %v1045_v39 = vpop.f32.mrb[26].mxu0  ;;  %v1153_v38 = vld [vmem:[#allocation2 + $0xc] sm:$0x3] }
 0xeae   :  { %1056 = vrot.lane.b32.xlu0 %v1043_v37, %s1924_s28  ;;  %v1674_v40 = vpop.f32.mrb[27].mxu0  ;;  %v1048_v48 = vadd.f32 %v1043_v37, %v999_v47  ;;  %v1154_v39 = vld [vmem:[#allocation3 + $0x2] sm:$0x3] }
 0xeaf   :  { %v1115_v41 = vpop.f32.mrb[24].mxu1 }
 0xeb0   :  { %v1116_v43 = vadd.f32 %v2068_v27, %v1115_v41  ;;  %v1681_v44 = vpop.f32.mrb[25].mxu1  ;;  %v1512_v50 = vmul.f32 -1.442695, %v1048_v48 }
 0xeb1   :  { %v1118_v45 = vpop.f32.mrb[26].mxu1 }
 0xeb2   :  { %1129 = vrot.lane.b32.xlu1 %v1116_v43, %s1924_s28  ;;  %v1682_v46 = vpop.f32.mrb[27].mxu1  ;;  %v1121_v51 = vadd.f32 %v1116_v43, %v1000_v49  ;;  %1793 = vpow2.f32 %v1512_v50 }
 0xeb4   :  { %v1514_v53 = vmul.f32 -1.442695, %v1121_v51 }
 0xeb6   :  { %1795 = vpow2.f32 %v1514_v53 }
 0xebc   :  { %v1794_v54 = vpop.eup %1793 }
 0xebd   :  { %v1052_v55 = vadd.f32 1.0, %v1794_v54 }
 0xebf   :  { %1797 = vrcp.f32 %v1052_v55 }
 0xec0   :  { %v1796_v56 = vpop.eup %1795 }
 0xec1   :  { %v1125_v57 = vadd.f32 1.0, %v1796_v56 }
 0xec3   :  { %1799 = vrcp.f32 %v1125_v57 }
 0xec9   :  { %v1798_v58 = vpop.eup %1797 }
 0xeca   :  { %v1066_v12 = vsub.f32 1.0, %v1798_v58  ;;  %v1072_v14 = vmul.f32 %v1798_v58, %v2221_v23 }
 0xecd   :  { %v1800_v61 = vpop.eup %1799 }
 0xece   :  { %v1139_v17 = vsub.f32 1.0, %v1800_v61  ;;  %v1145_v19 = vmul.f32 %v1800_v61, %v2226_v31 }
 0xf20   :  { %v1057_v59 = vpop.permute.xlu0 %1056 }
 0xf21   :  { %v1059_v60 = vmul.f32 %v1798_v58, %v1057_v59 }
 0xf23   :  { %1061 = vrot.lane.b32.xlu0 %v1059_v60, %s1924_s28 }
 0xf24   :  { %v1130_v62 = vpop.permute.xlu1 %1129 }
 0xf25   :  { %v1132_v1 = vmul.f32 %v1800_v61, %v1130_v62 }
 0xf27   :  { %1134 = vrot.lane.b32.xlu1 %v1132_v1, %s1924_s28 }
 0xf95   :  { %v1062_v2 = vpop.permute.xlu0 %1061 }
 0xf96   :  { %v1064_v3 = vadd.f32 %v1062_v2, %v999_v47 }
 0xf98   :  { %1801 = vtanh.f32 %v1064_v3 }
 0xf99   :  { %v1135_v4 = vpop.permute.xlu1 %1134 }
 0xf9a   :  { %v1137_v5 = vadd.f32 %v1135_v4, %v1000_v49 }
 0xf9c   :  { %1803 = vtanh.f32 %v1137_v5 }
 0xfa2   :  { %v1802_v10 = vpop.eup %1801 }
 0xfa3   :  { %1068 = vrot.lane.b32.xlu0 %v1802_v10, %s1933_s4 }
 0xfa6   :  { %v1804_v11 = vpop.eup %1803 }
 0xfa7   :  { %1141 = vrot.lane.b32.xlu1 %v1804_v11, %s1933_s4 }
0x1015   :  { %v1069_v13 = vpop.permute.xlu0 %1068 }
0x1016   :  { %v1071_v15 = vmul.f32 %v1069_v13, %v1066_v12 }
0x1018   :  { %v2255_v16 = vadd.f32 %v1072_v14, %v1071_v15 }
0x1019   :  { %v1142_v18 = vpop.permute.xlu1 %1141 }
0x101a   :  { %v1144_v20 = vmul.f32 %v1142_v18, %v1139_v17  ;;  %v1155_v21 = vpack.c.bf16 %v2255_v16, %v2255_v16 }
0x101c   :  { %v2260_v22 = vadd.f32 %v1145_v19, %v1144_v20  ;;  %1157 = vrot.lane.b32.xlu0 %v1155_v21, %s1933_s4 }
0x101e   :  { %v1228_v24 = vpack.c.bf16 %v2260_v22, %v2260_v22 }
0x1020   :  { %1230 = vrot.lane.b32.xlu1 %v1228_v24, %s1933_s4 }
0x108e   :  { %v1158_v26 = vpop.permute.xlu0 %1157 }
0x108f   :  { %1688 = vmatmul.mubr.msk.bf16.vlgmr.msra.gmra.mrb[28].mxu0 %vm227_vm4, %v1158_v26 }
0x1090   :  { %1700 = vmatpush3.bf16.msra.mxu0 %v2017_v6  ;;  %1703 = vmatprep.mubr.msk.bf16.mxu0 %vm1931_vm0, %v1930_v0 }
0x1091   :  { %1701 = vmatprep.subr.bf16.mxu0 %v1930_v0 }
0x1092   :  { %v1231_v28 = vpop.permute.xlu1 %1230 }
0x1093   :  { %1696 = vmatmul.mubr.msk.bf16.vlgmr.msra.gmra.mrb[28].mxu1 %vm227_vm4, %v1231_v28 }
0x1094   :  { %1702 = vmatpush3.bf16.msra.mxu0 %v2023_v8  ;;  %1708 = vmatpush3.bf16.msra.mxu1 %v2020_v7 }
0x1095   :  { %1709 = vmatprep.subr.bf16.mxu1 %v1930_v0  ;;  %1711 = vmatprep.mubr.msk.bf16.mxu1 %vm1931_vm0, %v1930_v0 }
0x1098   :  { %1710 = vmatpush3.bf16.msra.mxu1 %v2029_v9 }
0x1162   :  { %v1196_v6 = vpop.f32.mrb[28].mxu0 }
0x1163   :  { %v1197_v29 = vadd.f32 %v2062_v25, %v1196_v6  ;;  %v1689_v30 = vpop.f32.mrb[29].mxu0 }
0x1164   :  { %v1199_v32 = vpop.f32.mrb[30].mxu0  ;;  %v1307_v30 = vld [vmem:[#allocation2 + $0xe] sm:$0x3] }
0x1165   :  { %1210 = vrot.lane.b32.xlu0 %v1197_v29, %s1924_s28  ;;  %v1690_v34 = vpop.f32.mrb[31].mxu0  ;;  %v1202_v0 = vadd.f32 %v1197_v29, %v1153_v38 }
0x1166   :  { %v1269_v35 = vpop.f32.mrb[28].mxu1  ;;  %v1308_v34 = vld [vmem:[#allocation3] sm:$0x3] }
0x1167   :  { %v1270_v8 = vadd.f32 %v2068_v27, %v1269_v35  ;;  %v1697_v36 = vpop.f32.mrb[29].mxu1  ;;  %v1516_v9 = vmul.f32 -1.442695, %v1202_v0 }
0x1168   :  { %v1272_v7 = vpop.f32.mrb[30].mxu1 }
0x1169   :  { %1283 = vrot.lane.b32.xlu1 %v1270_v8, %s1924_s28  ;;  %v1698_v37 = vpop.f32.mrb[31].mxu1  ;;  %v1275_v40 = vadd.f32 %v1270_v8, %v1154_v39  ;;  %1805 = vpow2.f32 %v1516_v9 }
0x116b   :  { %v1518_v41 = vmul.f32 -1.442695, %v1275_v40 }
0x116d   :  { %1807 = vpow2.f32 %v1518_v41 }
0x1173   :  { %v1806_v43 = vpop.eup %1805 }
0x1174   :  { %v1206_v44 = vadd.f32 1.0, %v1806_v43 }
0x1176   :  { %1809 = vrcp.f32 %v1206_v44 }
0x1177   :  { %v1808_v45 = vpop.eup %1807 }
0x1178   :  { %v1279_v46 = vadd.f32 1.0, %v1808_v45 }
0x117a   :  { %1811 = vrcp.f32 %v1279_v46 }
0x1180   :  { %v1810_v47 = vpop.eup %1809 }
0x1181   :  { %v1220_v60 = vsub.f32 1.0, %v1810_v47  ;;  %v1226_v62 = vmul.f32 %v1810_v47, %v2255_v16 }
0x1184   :  { %v1812_v50 = vpop.eup %1811 }
0x1185   :  { %v1293_v3 = vsub.f32 1.0, %v1812_v50  ;;  %v1299_v5 = vmul.f32 %v1812_v50, %v2260_v22 }
0x11d7   :  { %v1211_v48 = vpop.permute.xlu0 %1210 }
0x11d8   :  { %v1213_v49 = vmul.f32 %v1810_v47, %v1211_v48 }
0x11da   :  { %1215 = vrot.lane.b32.xlu0 %v1213_v49, %s1924_s28 }
0x11db   :  { %v1284_v51 = vpop.permute.xlu1 %1283 }
0x11dc   :  { %v1286_v53 = vmul.f32 %v1812_v50, %v1284_v51 }
0x11de   :  { %1288 = vrot.lane.b32.xlu1 %v1286_v53, %s1924_s28 }
0x124c   :  { %v1216_v54 = vpop.permute.xlu0 %1215 }
0x124d   :  { %v1218_v55 = vadd.f32 %v1216_v54, %v1153_v38 }
0x124f   :  { %1813 = vtanh.f32 %v1218_v55 }
0x1250   :  { %v1289_v56 = vpop.permute.xlu1 %1288 }
0x1251   :  { %v1291_v57 = vadd.f32 %v1289_v56, %v1154_v39 }
0x1253   :  { %1815 = vtanh.f32 %v1291_v57 }
0x1259   :  { %v1814_v58 = vpop.eup %1813 }
0x125a   :  { %1222 = vrot.lane.b32.xlu0 %v1814_v58, %s1933_s4 }
0x125d   :  { %v1816_v59 = vpop.eup %1815 }
0x125e   :  { %1295 = vrot.lane.b32.xlu1 %v1816_v59, %s1933_s4 }
0x12cc   :  { %v1223_v61 = vpop.permute.xlu0 %1222 }
0x12cd   :  { %v1225_v1 = vmul.f32 %v1223_v61, %v1220_v60 }
0x12cf   :  { %v2287_v2 = vadd.f32 %v1226_v62, %v1225_v1 }
0x12d0   :  { %v1296_v4 = vpop.permute.xlu1 %1295 }
0x12d1   :  { %v1298_v10 = vmul.f32 %v1296_v4, %v1293_v3  ;;  %v1309_v11 = vpack.c.bf16 %v2287_v2, %v2287_v2 }
0x12d3   :  { %v2292_v12 = vadd.f32 %v1299_v5, %v1298_v10  ;;  %1311 = vrot.lane.b32.xlu0 %v1309_v11, %s1933_s4 }
0x12d5   :  { %v1382_v13 = vpack.c.bf16 %v2292_v12, %v2292_v12 }
0x12d7   :  { %1384 = vrot.lane.b32.xlu1 %v1382_v13, %s1933_s4 }
0x1345   :  { %v1312_v14 = vpop.permute.xlu0 %1311 }
0x1346   :  { %1704 = vmatmul.mubr.msk.bf16.vlgmr.msra.gmra.mrb[32].mxu0 %vm227_vm4, %v1312_v14 }
0x1349   :  { %v1385_v15 = vpop.permute.xlu1 %1384 }
0x134a   :  { %1712 = vmatmul.mubr.msk.bf16.vlgmr.msra.gmra.mrb[32].mxu1 %vm227_vm4, %v1385_v15 }
0x1419   :  { %v1350_v17 = vpop.f32.mrb[32].mxu0 }
0x141a   :  { %v1351_v18 = vadd.f32 %v2062_v25, %v1350_v17  ;;  %v1705_v19 = vpop.f32.mrb[33].mxu0 }
0x141b   :  { %v1353_v20 = vpop.f32.mrb[34].mxu0 }
0x141c   :  { %1364 = vrot.lane.b32.xlu0 %v1351_v18, %s1924_s28  ;;  %v1706_v21 = vpop.f32.mrb[35].mxu0  ;;  %v1356_v32 = vadd.f32 %v1351_v18, %v1307_v30 }
0x141d   :  { %v1423_v24 = vpop.f32.mrb[32].mxu1 }
0x141e   :  { %v1424_v26 = vadd.f32 %v2068_v27, %v1423_v24  ;;  %v1713_v28 = vpop.f32.mrb[33].mxu1  ;;  %v1520_v35 = vmul.f32 -1.442695, %v1356_v32 }
0x141f   :  { %v1426_v6 = vpop.f32.mrb[34].mxu1 }
0x1420   :  { %1437 = vrot.lane.b32.xlu1 %v1424_v26, %s1924_s28  ;;  %v1714_v29 = vpop.f32.mrb[35].mxu1  ;;  %v1429_v8 = vadd.f32 %v1424_v26, %v1308_v34  ;;  %1817 = vpow2.f32 %v1520_v35 }
0x1422   :  { %v1522_v25 = vmul.f32 -1.442695, %v1429_v8 }
0x1424   :  { %1819 = vpow2.f32 %v1522_v25 }
0x142a   :  { %v1818_v36 = vpop.eup %1817 }
0x142b   :  { %v1360_v7 = vadd.f32 1.0, %v1818_v36 }
0x142d   :  { %1821 = vrcp.f32 %v1360_v7 }
0x142e   :  { %v1820_v37 = vpop.eup %1819 }
0x142f   :  { %v1433_v38 = vadd.f32 1.0, %v1820_v37 }
0x1431   :  { %1823 = vrcp.f32 %v1433_v38 }
0x1437   :  { %v1822_v27 = vpop.eup %1821 }
0x1438   :  { %v1380_v50 = vmul.f32 %v1822_v27, %v2287_v2 }
0x143b   :  { %v1824_v9 = vpop.eup %1823 }
0x143c   :  { %v1447_v54 = vsub.f32 1.0, %v1824_v9 }
0x148e   :  { %v1365_v0 = vpop.permute.xlu0 %1364 }
0x148f   :  { %v1367_v39 = vmul.f32 %v1822_v27, %v1365_v0 }
0x1491   :  { %1369 = vrot.lane.b32.xlu0 %v1367_v39, %s1924_s28 }
0x1492   :  { %v1438_v40 = vpop.permute.xlu1 %1437 }
0x1493   :  { %v1440_v41 = vmul.f32 %v1824_v9, %v1438_v40 }
0x1495   :  { %1442 = vrot.lane.b32.xlu1 %v1440_v41, %s1924_s28  ;;  %s1934_s28 = smov [#allocation10]  }
0x1496   :  { %s1466_s13 = sshll.u32 %s1934_s28, 4  ;;  %s1467_s13 = int_to_ptr.vmem [resolvable:$true] %s1466_s13 }
0x1497   :  { %s1895_s14 = scalar_lea.vmem %s1467_s13, 256  ;;  %p1900_p11 = scmp.lt.s32.totalorder %s1467_s13, %s1467_s13 }
0x1498   :  { %p1896_p10 = scmp.ne.s32.totalorder %s1467_s13, %s1895_s14  ;;  %p1901_p12 = scmp.lt.s32.totalorder %s1895_s14, %s1895_s14 }
0x1499   :  { %532 = vrot.lane.b32.xlu1 %v2113_v52, %s1933_s4 }
0x149a   :  { %p1902_p13 = por %p1901_p12, %p1900_p11 }
0x149c   :  { %p1903_p0 = pnand %p1902_p13, %p1896_p10 }
0x149d   :  { %840 = vrot.lane.b32.xlu1 %v2185_v33, %s1933_s4 }
0x14a1   :  { %1148 = vrot.lane.b32.xlu1 %v2255_v16, %s1933_s4 }
0x1503   :  { %v1370_v43 = vpop.permute.xlu0 %1369 }
0x1504   :  { %v1372_v44 = vadd.f32 %v1370_v43, %v1307_v30 }
0x1506   :  { %1825 = vtanh.f32 %v1372_v44 }
0x1507   :  { %v1443_v45 = vpop.permute.xlu1 %1442 }
0x1508   :  { %v1445_v46 = vadd.f32 %v1443_v45, %v1308_v34 }
0x150a   :  { %1827 = vtanh.f32 %v1445_v46 }
0x150b   :  { %v533_v47 = vpop.permute.xlu1 %532 }
0x150c   :  { %535 = vst.msk [vmem:[#allocation10 + $0x2] sm:$0x3] %vm379_vm5, %v533_v47 }
0x150d   :  { %1306 = vst.msk [vmem:[#allocation10 + $0x2] sm:$0x3] %vm381_vm3, %v2292_v12 }
0x150f   :  { %v841_v52 = vpop.permute.xlu1 %840 }
0x1510   :  { %v1826_v48 = vpop.eup %1825  ;;  %843 = vst.msk [vmem:[#allocation10 + $0x6] sm:$0x3] %vm379_vm5, %v841_v52 }
0x1511   :  { %998 = vst.msk [vmem:[#allocation10 + $0x6] sm:$0x3] %vm381_vm3, %v2226_v31  ;;  %1376 = vrot.lane.b32.xlu0 %v1826_v48, %s1933_s4  ;;  %v1374_v31 = vsub.f32 1.0, %v1822_v27 }
0x1513   :  { %v1149_v33 = vpop.permute.xlu1 %1148 }
0x1514   :  { %v1828_v16 = vpop.eup %1827  ;;  %1151 = vst.msk [vmem:[#allocation10 + $0xa] sm:$0x3] %vm379_vm5, %v1149_v33 }
0x1515   :  { %1449 = vrot.lane.b32.xlu1 %v1828_v16, %s1933_s4  ;;  %376 = vrot.lane.b32.xlu0 %v2078_v63, %s1933_s4  ;;  %v1453_v63 = vmul.f32 %v1824_v9, %v2292_v12 }
0x1519   :  { %686 = vrot.lane.b32.xlu0 %v2149_v42, %s1933_s4 }
0x151d   :  { %994 = vrot.lane.b32.xlu0 %v2221_v23, %s1933_s4 }
0x1521   :  { %1302 = vrot.lane.b32.xlu0 %v2287_v2, %s1933_s4 }
0x1583   :  { %v1377_v49 = vpop.permute.xlu0 %1376 }
0x1584   :  { %v1379_v51 = vmul.f32 %v1377_v49, %v1374_v31 }
0x1586   :  { %v1381_v53 = vadd.f32 %v1380_v50, %v1379_v51 }
0x1587   :  { %v1450_v55 = vpop.permute.xlu1 %1449  ;;  %v377_v56 = vpop.permute.xlu0 %376 }
0x1588   :  { %v1452_v57 = vmul.f32 %v1450_v55, %v1447_v54  ;;  %380 = vst.msk [vmem:[#allocation10] sm:$0x3] %vm379_vm5, %v377_v56  ;;  %1456 = vrot.lane.b32.xlu1 %v1381_v53, %s1933_s4 }
0x158a   :  { %v1454_v42 = vadd.f32 %v1453_v63, %v1452_v57 }
0x158b   :  { %v687_v23 = vpop.permute.xlu0 %686 }
0x158c   :  { %1460 = vst.msk [vmem:[#allocation10] sm:$0x3] %vm381_vm3, %v1454_v42 }
0x158d   :  { %689 = vst.msk [vmem:[#allocation10 + $0x4] sm:$0x3] %vm379_vm5, %v687_v23 }
0x158e   :  { %1152 = vst.msk [vmem:[#allocation10 + $0x4] sm:$0x3] %vm381_vm3, %v2260_v22 }
0x158f   :  { %v995_v58 = vpop.permute.xlu0 %994 }
0x1590   :  { %997 = vst.msk [vmem:[#allocation10 + $0x8] sm:$0x3] %vm379_vm5, %v995_v58 }
0x1593   :  { %v1303_v59 = vpop.permute.xlu0 %1302 }
0x1594   :  { %1305 = vst.msk [vmem:[#allocation10 + $0xc] sm:$0x3] %vm379_vm5, %v1303_v59 }
0x15fa   :  { %v1457_v60 = vpop.permute.xlu1 %1456 }
0x15fb   :  { %1459 = vst.msk [vmem:[#allocation10 + $0xe] sm:$0x3] %vm379_vm5, %v1457_v60 }
0x15fc   :  { %1906 = shalt.err (!%p1903_p0)
}
0x15fd   :  { %s1907_s18 = scalar_lea.hbm %s2360_s5, 256 }
0x15fe   :  { %p1908_p1 = scmp.ne.s32.totalorder %s2360_s5, %s1907_s18  ;;  %p1911_p2 = scmp.lt.u32.totalorder %s1907_s18, %s2360_s5 }
0x1600   :  { %p1913_p3 = pnand %p1911_p2, %p1908_p1 }
0x1602   :  { %1916 = shalt.err (!%p1913_p3)
}
0x1603   :  { %1472 = dma.vmem_to_hbm [thread:$0]  %s1467_s13, 256, %s2360_s5, [#allocation6], %s1927_s1, %s1927_s1, %s1928_s17  }
0x1604   :  { %1921 = dma.done.wait [#allocation6], 256  }
0x1605   :  { %1922 = vsyncadd [#allocation6], 4294967040 }
0x1606   :  { %1476 = vsyncpa [#allocation5], 1 }
0x1607   :  { %1477 = vsyncpa [#allocation8], 1 }
0x1608   :  { %1478 = vsyncpa [#allocation6], 1 }

</bundles_post_ra>
